<compile_context>
chip_gen: v7x
topology: tpu7x:2x2x1
jax: 0.10.0
libtpu: 0.0.40
codegen_flags: <defaults>
</compile_context>

<pallas_src>
import math

import jax
import jax.numpy as jnp
from jax.experimental import pallas as pl
from jax.experimental.pallas import tpu as pltpu

NUM_HEADS = 4
LN_EPS = 1e-6          # Annotated-Transformer LayerNorm eps
NEG_INF = -1e9         # masked_fill value


def _layer_norm(v, a, b):
    # Matches torch:  a * (x - mean) / (x.std(-1, unbiased) + eps) + b
    d = v.shape[-1]
    mean = jnp.mean(v, axis=-1, keepdims=True)
    var = jnp.sum((v - mean) ** 2, axis=-1, keepdims=True) * (1.0 / (d - 1))
    inv = pl.reciprocal(jnp.sqrt(var) + LN_EPS, approx=True)   # EUP slot
    return a * (v - mean) * inv + b


def make_encoder_kernel(num_layers, bblk, S, D, d_ff):
    H = NUM_HEADS
    dk = D // H
    BS = bblk * S
    scale = 1.0 / math.sqrt(dk)
    bf16 = jnp.bfloat16

    def kernel(x_ref, mask_ref,
               ln1_a_ref, ln1_b_ref,
               wqkv_ref, bqkv_ref, wo_ref, bo_ref,
               ln2_a_ref, ln2_b_ref,
               w1_ref, b1_ref, w2_ref, b2_ref,
               o_ref):
        # ---- loop-invariant loads (all cloned layers share these) ----------
        x = x_ref[...].reshape(BS, D)                # (BS, D) f32 residual stream
        m = mask_ref[...]                            # (bblk, 1, S) f32
        # per-(head, batch) group mask, group index g = h*bblk + b; the compare
        # is hoisted once for the whole stack.
        cond = jnp.concatenate([m] * H, axis=0) == 0.0   # (G, 1, S)

        ln1_a, ln1_b = ln1_a_ref[...], ln1_b_ref[...]
        ln2_a, ln2_b = ln2_a_ref[...], ln2_b_ref[...]
        wqkv, bqkv = wqkv_ref[...], bqkv_ref[...]    # bf16 (D,3D) / f32 (1,3D)
        wo, bo = wo_ref[...], bo_ref[...]            # bf16 (H,dk,D) / f32 (1,D)
        w1, b1 = w1_ref[...], b1_ref[...]            # bf16 (D,dff) / f32 (1,dff)
        w2, b2 = w2_ref[...], b2_ref[...]            # bf16 (dff,D) / f32 (1,D)

        # clones() => identical params in every layer; fuse the whole stack.
        for _ in range(num_layers):
            # -------- sublayer 0: x + SelfAttn(LayerNorm(x)) ----------------
            xn = _layer_norm(x, ln1_a, ln1_b)
            qkv = jnp.dot(xn.astype(bf16), wqkv,
                          preferred_element_type=jnp.float32) + bqkv   # (BS,3D)

            def split_heads(col0):
                # lane slices -> stacked (G, S, dk); g = h*bblk + b
                parts = [qkv[:, col0 + h * dk: col0 + (h + 1) * dk]
                         .reshape(bblk, S, dk) for h in range(H)]
                return jnp.concatenate(parts, axis=0).astype(bf16)

            qg = split_heads(0)
            kg = split_heads(D)
            vg = split_heads(2 * D)

            # one batched contraction over all (head, batch) groups; contraction
            # on dk avoids materializing k^T.
            s = jnp.einsum('gqd,gkd->gqk', qg, kg,
                           preferred_element_type=jnp.float32) * scale  # (G,S,S)
            s = jnp.where(cond, jnp.float32(NEG_INF), s)   # masked_fill(mask==0)
            s_max = jnp.max(s, axis=-1, keepdims=True)
            p = jnp.exp(s - s_max)
            p = p * pl.reciprocal(jnp.sum(p, axis=-1, keepdims=True), approx=True)
            pv = jnp.einsum('gqk,gkd->gqd', p.astype(bf16), vg,
                            preferred_element_type=jnp.float32)         # (G,S,dk)

            # output projection accumulated per head (block-matmul identity) —
            # no lane-dim concatenate of 8-wide head chunks.
            proj = bo
            for h in range(H):
                ph = pv[h * bblk:(h + 1) * bblk].reshape(BS, dk).astype(bf16)
                proj = proj + jnp.dot(ph, wo[h],
                                      preferred_element_type=jnp.float32)
            x = x + proj                              # dropout == identity (eval)

            # -------- sublayer 1: x + FFN(LayerNorm(x)) ---------------------
            xn2 = _layer_norm(x, ln2_a, ln2_b)
            hdn = jnp.dot(xn2.astype(bf16), w1,
                          preferred_element_type=jnp.float32) + b1
            hdn = jnp.maximum(hdn, 0.0)               # ReLU
            ff = jnp.dot(hdn.astype(bf16), w2,
                         preferred_element_type=jnp.float32) + b2
            x = x + ff

        o_ref[...] = x.reshape(bblk, S, D)

    return kernel


def make_encoder_call(B, S, D, d_ff, num_layers, bblk):
    H = NUM_HEADS
    dk = D // H
    kernel = make_encoder_kernel(num_layers, bblk, S, D, d_ff)

    def fixed(shape):
        n = len(shape)
        return pl.BlockSpec(shape, lambda b, _n=n: (0,) * _n)

    in_specs = [
        pl.BlockSpec((bblk, S, D), lambda b: (b, 0, 0)),   # x
        pl.BlockSpec((bblk, 1, S), lambda b: (b, 0, 0)),   # mask
        fixed((1, D)), fixed((1, D)),                      # ln1 scale / bias
        fixed((D, 3 * D)), fixed((1, 3 * D)),              # Wqkv (bf16), bqkv
        fixed((H, dk, D)), fixed((1, D)),                  # Wo (bf16, head-major), bo
        fixed((1, D)), fixed((1, D)),                      # ln2 scale / bias
        fixed((D, d_ff)), fixed((1, d_ff)),                # W1 (bf16), b1
        fixed((d_ff, D)), fixed((1, D)),                   # W2 (bf16), b2
    ]
    return pl.pallas_call(
        kernel,
        out_shape=jax.ShapeDtypeStruct((B, S, D), jnp.float32),
        grid=(B // bblk,),
        in_specs=in_specs,
        out_specs=pl.BlockSpec((bblk, S, D), lambda b: (b, 0, 0)),
        compiler_params=pltpu.CompilerParams(
            dimension_semantics=("parallel",),
            vmem_limit_bytes=32 * 1024 * 1024,
        ),
    )


def init_layer_params(key, D, d_ff):
    """Deterministic synthetic init (nn.Linear-style uniform bounds), f32.

    Linear weights stored pre-transposed as (in, out) so kernels do y = x@W + b.
    """
    ks = jax.random.split(key, 6)

    def lin(k, fan_in, fan_out):
        bound = 1.0 / math.sqrt(fan_in)
        kw, kb = jax.random.split(k)
        w = jax.random.uniform(kw, (fan_in, fan_out), jnp.float32, -bound, bound)
        b = jax.random.uniform(kb, (1, fan_out), jnp.float32, -bound, bound)
        return w, b

    wq, bq = lin(ks[0], D, D)
    wk, bk = lin(ks[1], D, D)
    wv, bv = lin(ks[2], D, D)
    wo, bo = lin(ks[3], D, D)
    w1, b1 = lin(ks[4], D, d_ff)
    w2, b2 = lin(ks[5], d_ff, D)
    ln1_a = jnp.ones((1, D), jnp.float32)
    ln1_b = jnp.zeros((1, D), jnp.float32)
    ln2_a = jnp.ones((1, D), jnp.float32)
    ln2_b = jnp.zeros((1, D), jnp.float32)
    wqkv = jnp.concatenate([wq, wk, wv], axis=1)       # fused QKV weight (D, 3D)
    bqkv = jnp.concatenate([bq, bk, bv], axis=1)       # (1, 3D)
    return (ln1_a, ln1_b, wqkv, bqkv, wo, bo, ln2_a, ln2_b, w1, b1, w2, b2)


def pack_params_for_kernel(params, D):
    """bf16 MXU weights (halves weight DMA); biases / LN params stay f32."""
    (ln1_a, ln1_b, wqkv, bqkv, wo, bo, ln2_a, ln2_b, w1, b1, w2, b2) = params
    H = NUM_HEADS
    dk = D // H
    bf16 = jnp.bfloat16
    return (ln1_a, ln1_b,
            wqkv.astype(bf16), bqkv,
            wo.reshape(H, dk, D).astype(bf16), bo,
            ln2_a, ln2_b,
            w1.astype(bf16), b1,
            w2.astype(bf16), b2)


# ---- pure-JAX reference (f32) for a gross-error sanity check ----------------
def _layer_norm_ref(v, a, b):
    d = v.shape[-1]
    mean = jnp.mean(v, axis=-1, keepdims=True)
    std = jnp.sqrt(jnp.sum((v - mean) ** 2, axis=-1, keepdims=True) / (d - 1))
    return a * (v - mean) / (std + LN_EPS) + b


def encoder_reference(x, mask, params, num_layers):
    (ln1_a, ln1_b, wqkv, bqkv, wo, bo, ln2_a, ln2_b, w1, b1, w2, b2) = params
    B, S, D = x.shape
    H = NUM_HEADS
    dk = D // H
    for _ in range(num_layers):
        xn = _layer_norm_ref(x, ln1_a, ln1_b)
        qkv = xn @ wqkv + bqkv
        q, k, v = qkv[..., :D], qkv[..., D:2 * D], qkv[..., 2 * D:]
        q = q.reshape(B, S, H, dk).transpose(0, 2, 1, 3)
        k = k.reshape(B, S, H, dk).transpose(0, 2, 1, 3)
        v = v.reshape(B, S, H, dk).transpose(0, 2, 1, 3)
        s = jnp.einsum('bhqd,bhkd->bhqk', q, k) / math.sqrt(dk)
        s = jnp.where(mask[:, None, :, :] == 0.0, NEG_INF, s)
        p = jax.nn.softmax(s, axis=-1)
        attn = jnp.einsum('bhqk,bhkd->bhqd', p, v).transpose(0, 2, 1, 3).reshape(B, S, D)
        x = x + attn @ wo + bo
        xn2 = _layer_norm_ref(x, ln2_a, ln2_b)
        x = x + jnp.maximum(xn2 @ w1 + b1, 0.0) @ w2 + b2
    return x


if __name__ == "__main__":
    B, S, D, D_FF, N_LAYERS = 2, 8, 32, 64, 2
    key = jax.random.PRNGKey(0)
    kx, kp = jax.random.split(key)

    x = jax.random.normal(kx, (B, S, D), jnp.float32)
    # simple src mask: last two key positions are padding
    mask = jnp.ones((B, 1, S), jnp.float32).at[:, :, -2:].set(0.0)

    params = init_layer_params(kp, D, D_FF)
    kparams = pack_params_for_kernel(params, D)

    # Pack enough batch elements into each grid step to raise the matmul
    # M-dimension toward 128 rows, while keeping the grid axis "parallel"
    # (multiple grid steps can be sharded across TensorCores when B is large).
    bblk = min(B, max(1, 128 // S))
    while B % bblk:
        bblk -= 1

    encoder = make_encoder_call(B, S, D, D_FF, N_LAYERS, bblk)
    out = encoder(x, mask, *kparams)
    jax.block_until_ready(out)

    assert out.shape == (B, S, D)
    assert bool(jnp.all(jnp.isfinite(out)))
    ref = encoder_reference(x, mask, params, N_LAYERS)
    # bf16 MXU inputs + approx reciprocal -> loose tolerance vs f32 reference
    max_err = float(jnp.max(jnp.abs(out - ref)))
    assert max_err < 0.2, max_err
    print("KERNEL_OK")
</pallas_src>

<mosaic_0001>
module attributes {stable_mosaic.version = 11 : i64} {
  func.func @kernel(%arg0: i32, %arg1: memref<2x8x32xf32, #tpu.memory_space<vmem>>, %arg2: memref<2x1x8xf32, #tpu.memory_space<vmem>>, %arg3: memref<1x32xf32, #tpu.memory_space<vmem>>, %arg4: memref<1x32xf32, #tpu.memory_space<vmem>>, %arg5: memref<32x96xbf16, #tpu.memory_space<vmem>>, %arg6: memref<1x96xf32, #tpu.memory_space<vmem>>, %arg7: memref<4x8x32xbf16, #tpu.memory_space<vmem>>, %arg8: memref<1x32xf32, #tpu.memory_space<vmem>>, %arg9: memref<1x32xf32, #tpu.memory_space<vmem>>, %arg10: memref<1x32xf32, #tpu.memory_space<vmem>>, %arg11: memref<32x64xbf16, #tpu.memory_space<vmem>>, %arg12: memref<1x64xf32, #tpu.memory_space<vmem>>, %arg13: memref<64x32xbf16, #tpu.memory_space<vmem>>, %arg14: memref<1x32xf32, #tpu.memory_space<vmem>>, %arg15: memref<2x8x32xf32, #tpu.memory_space<vmem>>) attributes {dimension_semantics = [#tpu.dimension_semantics<parallel>], iteration_bounds = array<i64: 1>, scalar_prefetch = 0 : i64, scratch_operands = 0 : i64, tpu.core_type = #tpu.core_type<tc>, window_params = [{transform_indices = @transform_0, window_bounds = array<i64: 2, 8, 32>}, {transform_indices = @transform_1, window_bounds = array<i64: 2, 1, 8>}, {pipeline_mode = #tpu.pipeline_mode<synchronous>, transform_indices = @transform_2, window_bounds = array<i64: 1, 32>}, {pipeline_mode = #tpu.pipeline_mode<synchronous>, transform_indices = @transform_3, window_bounds = array<i64: 1, 32>}, {pipeline_mode = #tpu.pipeline_mode<synchronous>, transform_indices = @transform_4, window_bounds = array<i64: 32, 96>}, {pipeline_mode = #tpu.pipeline_mode<synchronous>, transform_indices = @transform_5, window_bounds = array<i64: 1, 96>}, {pipeline_mode = #tpu.pipeline_mode<synchronous>, transform_indices = @transform_6, window_bounds = array<i64: 4, 8, 32>}, {pipeline_mode = #tpu.pipeline_mode<synchronous>, transform_indices = @transform_7, window_bounds = array<i64: 1, 32>}, {pipeline_mode = #tpu.pipeline_mode<synchronous>, transform_indices = @transform_8, window_bounds = array<i64: 1, 32>}, {pipeline_mode = #tpu.pipeline_mode<synchronous>, transform_indices = @transform_9, window_bounds = array<i64: 1, 32>}, {pipeline_mode = #tpu.pipeline_mode<synchronous>, transform_indices = @transform_10, window_bounds = array<i64: 32, 64>}, {pipeline_mode = #tpu.pipeline_mode<synchronous>, transform_indices = @transform_11, window_bounds = array<i64: 1, 64>}, {pipeline_mode = #tpu.pipeline_mode<synchronous>, transform_indices = @transform_12, window_bounds = array<i64: 64, 32>}, {pipeline_mode = #tpu.pipeline_mode<synchronous>, transform_indices = @transform_13, window_bounds = array<i64: 1, 32>}, {transform_indices = @transform_14, window_bounds = array<i64: 2, 8, 32>}]} {
    %c0 = arith.constant 0 : index
    %c0_0 = arith.constant 0 : index
    %c0_1 = arith.constant 0 : index
    %0 = vector.load %arg1[%c0, %c0_0, %c0_1] : memref<2x8x32xf32, #tpu.memory_space<vmem>>, vector<2x8x32xf32>
    %1 = vector.shape_cast %0 : vector<2x8x32xf32> to vector<16x32xf32>
    %c0_2 = arith.constant 0 : index
    %c0_3 = arith.constant 0 : index
    %c0_4 = arith.constant 0 : index
    %2 = vector.load %arg2[%c0_2, %c0_3, %c0_4] : memref<2x1x8xf32, #tpu.memory_space<vmem>>, vector<2x1x8xf32>
    %3 = tpu.concatenate %2, %2, %2, %2 in 0 : vector<2x1x8xf32>, vector<2x1x8xf32>, vector<2x1x8xf32>, vector<2x1x8xf32> -> vector<8x1x8xf32>
    %cst = arith.constant 0.000000e+00 : f32
    %4 = vector.broadcast %cst : f32 to vector<8x1x8xf32>
    %5 = arith.cmpf oeq, %3, %4 : vector<8x1x8xf32>
    %c0_5 = arith.constant 0 : index
    %c0_6 = arith.constant 0 : index
    %6 = vector.load %arg3[%c0_5, %c0_6] : memref<1x32xf32, #tpu.memory_space<vmem>>, vector<1x32xf32>
    %c0_7 = arith.constant 0 : index
    %c0_8 = arith.constant 0 : index
    %7 = vector.load %arg4[%c0_7, %c0_8] : memref<1x32xf32, #tpu.memory_space<vmem>>, vector<1x32xf32>
    %c0_9 = arith.constant 0 : index
    %c0_10 = arith.constant 0 : index
    %8 = vector.load %arg9[%c0_9, %c0_10] : memref<1x32xf32, #tpu.memory_space<vmem>>, vector<1x32xf32>
    %c0_11 = arith.constant 0 : index
    %c0_12 = arith.constant 0 : index
    %9 = vector.load %arg10[%c0_11, %c0_12] : memref<1x32xf32, #tpu.memory_space<vmem>>, vector<1x32xf32>
    %c0_13 = arith.constant 0 : index
    %c0_14 = arith.constant 0 : index
    %10 = vector.load %arg5[%c0_13, %c0_14] : memref<32x96xbf16, #tpu.memory_space<vmem>>, vector<32x96xbf16>
    %c0_15 = arith.constant 0 : index
    %c0_16 = arith.constant 0 : index
    %11 = vector.load %arg6[%c0_15, %c0_16] : memref<1x96xf32, #tpu.memory_space<vmem>>, vector<1x96xf32>
    %c0_17 = arith.constant 0 : index
    %c0_18 = arith.constant 0 : index
    %c0_19 = arith.constant 0 : index
    %12 = vector.load %arg7[%c0_17, %c0_18, %c0_19] : memref<4x8x32xbf16, #tpu.memory_space<vmem>>, vector<4x8x32xbf16>
    %c0_20 = arith.constant 0 : index
    %c0_21 = arith.constant 0 : index
    %13 = vector.load %arg8[%c0_20, %c0_21] : memref<1x32xf32, #tpu.memory_space<vmem>>, vector<1x32xf32>
    %c0_22 = arith.constant 0 : index
    %c0_23 = arith.constant 0 : index
    %14 = vector.load %arg11[%c0_22, %c0_23] : memref<32x64xbf16, #tpu.memory_space<vmem>>, vector<32x64xbf16>
    %c0_24 = arith.constant 0 : index
    %c0_25 = arith.constant 0 : index
    %15 = vector.load %arg12[%c0_24, %c0_25] : memref<1x64xf32, #tpu.memory_space<vmem>>, vector<1x64xf32>
    %c0_26 = arith.constant 0 : index
    %c0_27 = arith.constant 0 : index
    %16 = vector.load %arg13[%c0_26, %c0_27] : memref<64x32xbf16, #tpu.memory_space<vmem>>, vector<64x32xbf16>
    %c0_28 = arith.constant 0 : index
    %c0_29 = arith.constant 0 : index
    %17 = vector.load %arg14[%c0_28, %c0_29] : memref<1x32xf32, #tpu.memory_space<vmem>>, vector<1x32xf32>
    %cst_30 = arith.constant dense<0.000000e+00> : vector<16xf32>
    %18 = vector.multi_reduction <add>, %1, %cst_30 [1] : vector<16x32xf32> to vector<16xf32>
    %19 = vector.shape_cast %18 : vector<16xf32> to vector<16x1xf32>
    %cst_31 = arith.constant 3.200000e+01 : f32
    %20 = vector.broadcast %cst_31 : f32 to vector<16x1xf32>
    %21 = arith.divf %19, %20 : vector<16x1xf32>
    %22 = vector.broadcast %21 : vector<16x1xf32> to vector<16x32xf32>
    %23 = arith.subf %1, %22 : vector<16x32xf32>
    %24 = arith.mulf %23, %23 : vector<16x32xf32>
    %cst_32 = arith.constant dense<0.000000e+00> : vector<16xf32>
    %25 = vector.multi_reduction <add>, %24, %cst_32 [1] : vector<16x32xf32> to vector<16xf32>
    %26 = vector.shape_cast %25 : vector<16xf32> to vector<16x1xf32>
    %cst_33 = arith.constant 0.0322580636 : f32
    %27 = vector.broadcast %cst_33 : f32 to vector<16x1xf32>
    %28 = arith.mulf %26, %27 : vector<16x1xf32>
    %29 = math.sqrt %28 : vector<16x1xf32>
    %cst_34 = arith.constant 9.99999997E-7 : f32
    %30 = vector.broadcast %cst_34 : f32 to vector<16x1xf32>
    %31 = arith.addf %29, %30 : vector<16x1xf32>
    %32 = tpu.reciprocal %31 {approx = true} : vector<16x1xf32> -> vector<16x1xf32>
    %33 = vector.broadcast %21 : vector<16x1xf32> to vector<16x32xf32>
    %34 = arith.subf %1, %33 : vector<16x32xf32>
    %35 = vector.broadcast %6 : vector<1x32xf32> to vector<16x32xf32>
    %36 = arith.mulf %35, %34 : vector<16x32xf32>
    %37 = vector.broadcast %32 : vector<16x1xf32> to vector<16x32xf32>
    %38 = arith.mulf %36, %37 : vector<16x32xf32>
    %39 = vector.broadcast %7 : vector<1x32xf32> to vector<16x32xf32>
    %40 = arith.addf %38, %39 : vector<16x32xf32>
    %41 = arith.truncf %40 : vector<16x32xf32> to vector<16x32xbf16>
    %cst_35 = arith.constant dense<0.000000e+00> : vector<16x96xf32>
    %42 = tpu.matmul %41, %10, %cst_35 {dimension_numbers = #tpu.dot_dimension_numbers<[1], [0], [0], [1], [0, 0, 1, 1], [], []>} : vector<16x32xbf16>, vector<32x96xbf16>, vector<16x96xf32> -> vector<16x96xf32>
    %43 = vector.broadcast %11 : vector<1x96xf32> to vector<16x96xf32>
    %44 = arith.addf %42, %43 : vector<16x96xf32>
    %45 = vector.extract_strided_slice %44 {offsets = [0, 0], sizes = [16, 8], strides = [1, 1]} : vector<16x96xf32> to vector<16x8xf32>
    %46 = vector.shape_cast %45 : vector<16x8xf32> to vector<2x8x8xf32>
    %47 = vector.extract_strided_slice %44 {offsets = [0, 8], sizes = [16, 8], strides = [1, 1]} : vector<16x96xf32> to vector<16x8xf32>
    %48 = vector.shape_cast %47 : vector<16x8xf32> to vector<2x8x8xf32>
    %49 = vector.extract_strided_slice %44 {offsets = [0, 16], sizes = [16, 8], strides = [1, 1]} : vector<16x96xf32> to vector<16x8xf32>
    %50 = vector.shape_cast %49 : vector<16x8xf32> to vector<2x8x8xf32>
    %51 = vector.extract_strided_slice %44 {offsets = [0, 24], sizes = [16, 8], strides = [1, 1]} : vector<16x96xf32> to vector<16x8xf32>
    %52 = vector.shape_cast %51 : vector<16x8xf32> to vector<2x8x8xf32>
    %53 = tpu.concatenate %46, %48, %50, %52 in 0 : vector<2x8x8xf32>, vector<2x8x8xf32>, vector<2x8x8xf32>, vector<2x8x8xf32> -> vector<8x8x8xf32>
    %54 = arith.truncf %53 : vector<8x8x8xf32> to vector<8x8x8xbf16>
    %55 = vector.extract_strided_slice %44 {offsets = [0, 32], sizes = [16, 8], strides = [1, 1]} : vector<16x96xf32> to vector<16x8xf32>
    %56 = vector.shape_cast %55 : vector<16x8xf32> to vector<2x8x8xf32>
    %57 = vector.extract_strided_slice %44 {offsets = [0, 40], sizes = [16, 8], strides = [1, 1]} : vector<16x96xf32> to vector<16x8xf32>
    %58 = vector.shape_cast %57 : vector<16x8xf32> to vector<2x8x8xf32>
    %59 = vector.extract_strided_slice %44 {offsets = [0, 48], sizes = [16, 8], strides = [1, 1]} : vector<16x96xf32> to vector<16x8xf32>
    %60 = vector.shape_cast %59 : vector<16x8xf32> to vector<2x8x8xf32>
    %61 = vector.extract_strided_slice %44 {offsets = [0, 56], sizes = [16, 8], strides = [1, 1]} : vector<16x96xf32> to vector<16x8xf32>
    %62 = vector.shape_cast %61 : vector<16x8xf32> to vector<2x8x8xf32>
    %63 = tpu.concatenate %56, %58, %60, %62 in 0 : vector<2x8x8xf32>, vector<2x8x8xf32>, vector<2x8x8xf32>, vector<2x8x8xf32> -> vector<8x8x8xf32>
    %64 = arith.truncf %63 : vector<8x8x8xf32> to vector<8x8x8xbf16>
    %65 = vector.extract_strided_slice %44 {offsets = [0, 64], sizes = [16, 8], strides = [1, 1]} : vector<16x96xf32> to vector<16x8xf32>
    %66 = vector.shape_cast %65 : vector<16x8xf32> to vector<2x8x8xf32>
    %67 = vector.extract_strided_slice %44 {offsets = [0, 72], sizes = [16, 8], strides = [1, 1]} : vector<16x96xf32> to vector<16x8xf32>
    %68 = vector.shape_cast %67 : vector<16x8xf32> to vector<2x8x8xf32>
    %69 = vector.extract_strided_slice %44 {offsets = [0, 80], sizes = [16, 8], strides = [1, 1]} : vector<16x96xf32> to vector<16x8xf32>
    %70 = vector.shape_cast %69 : vector<16x8xf32> to vector<2x8x8xf32>
    %71 = vector.extract_strided_slice %44 {offsets = [0, 88], sizes = [16, 8], strides = [1, 1]} : vector<16x96xf32> to vector<16x8xf32>
    %72 = vector.shape_cast %71 : vector<16x8xf32> to vector<2x8x8xf32>
    %73 = tpu.concatenate %66, %68, %70, %72 in 0 : vector<2x8x8xf32>, vector<2x8x8xf32>, vector<2x8x8xf32>, vector<2x8x8xf32> -> vector<8x8x8xf32>
    %74 = arith.truncf %73 : vector<8x8x8xf32> to vector<8x8x8xbf16>
    "tpu.trace_start"() <{level = 10 : i32, message = "gqd,gkd->gqk"}> : () -> ()
    %cst_36 = arith.constant dense<0.000000e+00> : vector<8x8x8xf32>
    %75 = tpu.matmul %54, %64, %cst_36 {dimension_numbers = #tpu.dot_dimension_numbers<[2], [2], [1], [1], [0, 0, 0, 1, 1, 1], [0], [0]>} : vector<8x8x8xbf16>, vector<8x8x8xbf16>, vector<8x8x8xf32> -> vector<8x8x8xf32>
    "tpu.trace_stop"() : () -> ()
    %cst_37 = arith.constant 0.353553385 : f32
    %76 = vector.broadcast %cst_37 : f32 to vector<8x8x8xf32>
    %77 = arith.mulf %75, %76 : vector<8x8x8xf32>
    %cst_38 = arith.constant -1.000000e+09 : f32
    %78 = vector.shape_cast %5 : vector<8x1x8xi1> to vector<8x1x8xi1>
    %79 = vector.broadcast %78 : vector<8x1x8xi1> to vector<8x8x8xi1>
    %80 = vector.broadcast %cst_38 : f32 to vector<8x8x8xf32>
    %81 = arith.select %79, %80, %77 : vector<8x8x8xi1>, vector<8x8x8xf32>
    %cst_39 = arith.constant dense<0xFF800000> : vector<8x8xf32>
    %82 = vector.multi_reduction <maximumf>, %81, %cst_39 [2] : vector<8x8x8xf32> to vector<8x8xf32>
    %83 = vector.shape_cast %82 : vector<8x8xf32> to vector<8x8x1xf32>
    %84 = vector.broadcast %83 : vector<8x8x1xf32> to vector<8x8x8xf32>
    %85 = arith.subf %81, %84 : vector<8x8x8xf32>
    %86 = math.exp %85 : vector<8x8x8xf32>
    %cst_40 = arith.constant dense<0.000000e+00> : vector<8x8xf32>
    %87 = vector.multi_reduction <add>, %86, %cst_40 [2] : vector<8x8x8xf32> to vector<8x8xf32>
    %88 = vector.shape_cast %87 : vector<8x8xf32> to vector<8x8x1xf32>
    %89 = tpu.reciprocal %88 {approx = true} : vector<8x8x1xf32> -> vector<8x8x1xf32>
    %90 = vector.broadcast %89 : vector<8x8x1xf32> to vector<8x8x8xf32>
    %91 = arith.mulf %86, %90 : vector<8x8x8xf32>
    %92 = arith.truncf %91 : vector<8x8x8xf32> to vector<8x8x8xbf16>
    "tpu.trace_start"() <{level = 10 : i32, message = "gqk,gkd->gqd"}> : () -> ()
    %cst_41 = arith.constant dense<0.000000e+00> : vector<8x8x8xf32>
    %93 = tpu.matmul %92, %74, %cst_41 {dimension_numbers = #tpu.dot_dimension_numbers<[2], [1], [1], [2], [0, 0, 0, 1, 1, 2], [0], [0]>} : vector<8x8x8xbf16>, vector<8x8x8xbf16>, vector<8x8x8xf32> -> vector<8x8x8xf32>
    "tpu.trace_stop"() : () -> ()
    %94 = vector.extract_strided_slice %93 {offsets = [0, 0, 0], sizes = [2, 8, 8], strides = [1, 1, 1]} : vector<8x8x8xf32> to vector<2x8x8xf32>
    %95 = vector.shape_cast %94 : vector<2x8x8xf32> to vector<16x8xf32>
    %96 = arith.truncf %95 : vector<16x8xf32> to vector<16x8xbf16>
    %97 = vector.extract_strided_slice %12 {offsets = [0, 0, 0], sizes = [1, 8, 32], strides = [1, 1, 1]} : vector<4x8x32xbf16> to vector<1x8x32xbf16>
    %98 = vector.shape_cast %97 : vector<1x8x32xbf16> to vector<8x32xbf16>
    %cst_42 = arith.constant dense<0.000000e+00> : vector<16x32xf32>
    %99 = tpu.matmul %96, %98, %cst_42 {dimension_numbers = #tpu.dot_dimension_numbers<[1], [0], [0], [1], [0, 0, 1, 1], [], []>} : vector<16x8xbf16>, vector<8x32xbf16>, vector<16x32xf32> -> vector<16x32xf32>
    %100 = vector.broadcast %13 : vector<1x32xf32> to vector<16x32xf32>
    %101 = arith.addf %100, %99 : vector<16x32xf32>
    %102 = vector.extract_strided_slice %93 {offsets = [2, 0, 0], sizes = [2, 8, 8], strides = [1, 1, 1]} : vector<8x8x8xf32> to vector<2x8x8xf32>
    %103 = vector.shape_cast %102 : vector<2x8x8xf32> to vector<16x8xf32>
    %104 = arith.truncf %103 : vector<16x8xf32> to vector<16x8xbf16>
    %105 = vector.extract_strided_slice %12 {offsets = [1, 0, 0], sizes = [1, 8, 32], strides = [1, 1, 1]} : vector<4x8x32xbf16> to vector<1x8x32xbf16>
    %106 = vector.shape_cast %105 : vector<1x8x32xbf16> to vector<8x32xbf16>
    %cst_43 = arith.constant dense<0.000000e+00> : vector<16x32xf32>
    %107 = tpu.matmul %104, %106, %cst_43 {dimension_numbers = #tpu.dot_dimension_numbers<[1], [0], [0], [1], [0, 0, 1, 1], [], []>} : vector<16x8xbf16>, vector<8x32xbf16>, vector<16x32xf32> -> vector<16x32xf32>
    %108 = arith.addf %101, %107 : vector<16x32xf32>
    %109 = vector.extract_strided_slice %93 {offsets = [4, 0, 0], sizes = [2, 8, 8], strides = [1, 1, 1]} : vector<8x8x8xf32> to vector<2x8x8xf32>
    %110 = vector.shape_cast %109 : vector<2x8x8xf32> to vector<16x8xf32>
    %111 = arith.truncf %110 : vector<16x8xf32> to vector<16x8xbf16>
    %112 = vector.extract_strided_slice %12 {offsets = [2, 0, 0], sizes = [1, 8, 32], strides = [1, 1, 1]} : vector<4x8x32xbf16> to vector<1x8x32xbf16>
    %113 = vector.shape_cast %112 : vector<1x8x32xbf16> to vector<8x32xbf16>
    %cst_44 = arith.constant dense<0.000000e+00> : vector<16x32xf32>
    %114 = tpu.matmul %111, %113, %cst_44 {dimension_numbers = #tpu.dot_dimension_numbers<[1], [0], [0], [1], [0, 0, 1, 1], [], []>} : vector<16x8xbf16>, vector<8x32xbf16>, vector<16x32xf32> -> vector<16x32xf32>
    %115 = arith.addf %108, %114 : vector<16x32xf32>
    %116 = vector.extract_strided_slice %93 {offsets = [6, 0, 0], sizes = [2, 8, 8], strides = [1, 1, 1]} : vector<8x8x8xf32> to vector<2x8x8xf32>
    %117 = vector.shape_cast %116 : vector<2x8x8xf32> to vector<16x8xf32>
    %118 = arith.truncf %117 : vector<16x8xf32> to vector<16x8xbf16>
    %119 = vector.extract_strided_slice %12 {offsets = [3, 0, 0], sizes = [1, 8, 32], strides = [1, 1, 1]} : vector<4x8x32xbf16> to vector<1x8x32xbf16>
    %120 = vector.shape_cast %119 : vector<1x8x32xbf16> to vector<8x32xbf16>
    %cst_45 = arith.constant dense<0.000000e+00> : vector<16x32xf32>
    %121 = tpu.matmul %118, %120, %cst_45 {dimension_numbers = #tpu.dot_dimension_numbers<[1], [0], [0], [1], [0, 0, 1, 1], [], []>} : vector<16x8xbf16>, vector<8x32xbf16>, vector<16x32xf32> -> vector<16x32xf32>
    %122 = arith.addf %115, %121 : vector<16x32xf32>
    %123 = arith.addf %1, %122 : vector<16x32xf32>
    %cst_46 = arith.constant dense<0.000000e+00> : vector<16xf32>
    %124 = vector.multi_reduction <add>, %123, %cst_46 [1] : vector<16x32xf32> to vector<16xf32>
    %125 = vector.shape_cast %124 : vector<16xf32> to vector<16x1xf32>
    %cst_47 = arith.constant 3.200000e+01 : f32
    %126 = vector.broadcast %cst_47 : f32 to vector<16x1xf32>
    %127 = arith.divf %125, %126 : vector<16x1xf32>
    %128 = vector.broadcast %127 : vector<16x1xf32> to vector<16x32xf32>
    %129 = arith.subf %123, %128 : vector<16x32xf32>
    %130 = arith.mulf %129, %129 : vector<16x32xf32>
    %cst_48 = arith.constant dense<0.000000e+00> : vector<16xf32>
    %131 = vector.multi_reduction <add>, %130, %cst_48 [1] : vector<16x32xf32> to vector<16xf32>
    %132 = vector.shape_cast %131 : vector<16xf32> to vector<16x1xf32>
    %cst_49 = arith.constant 0.0322580636 : f32
    %133 = vector.broadcast %cst_49 : f32 to vector<16x1xf32>
    %134 = arith.mulf %132, %133 : vector<16x1xf32>
    %135 = math.sqrt %134 : vector<16x1xf32>
    %cst_50 = arith.constant 9.99999997E-7 : f32
    %136 = vector.broadcast %cst_50 : f32 to vector<16x1xf32>
    %137 = arith.addf %135, %136 : vector<16x1xf32>
    %138 = tpu.reciprocal %137 {approx = true} : vector<16x1xf32> -> vector<16x1xf32>
    %139 = vector.broadcast %127 : vector<16x1xf32> to vector<16x32xf32>
    %140 = arith.subf %123, %139 : vector<16x32xf32>
    %141 = vector.broadcast %8 : vector<1x32xf32> to vector<16x32xf32>
    %142 = arith.mulf %141, %140 : vector<16x32xf32>
    %143 = vector.broadcast %138 : vector<16x1xf32> to vector<16x32xf32>
    %144 = arith.mulf %142, %143 : vector<16x32xf32>
    %145 = vector.broadcast %9 : vector<1x32xf32> to vector<16x32xf32>
    %146 = arith.addf %144, %145 : vector<16x32xf32>
    %147 = arith.truncf %146 : vector<16x32xf32> to vector<16x32xbf16>
    %cst_51 = arith.constant dense<0.000000e+00> : vector<16x64xf32>
    %148 = tpu.matmul %147, %14, %cst_51 {dimension_numbers = #tpu.dot_dimension_numbers<[1], [0], [0], [1], [0, 0, 1, 1], [], []>} : vector<16x32xbf16>, vector<32x64xbf16>, vector<16x64xf32> -> vector<16x64xf32>
    %149 = vector.broadcast %15 : vector<1x64xf32> to vector<16x64xf32>
    %150 = arith.addf %148, %149 : vector<16x64xf32>
    %cst_52 = arith.constant 0.000000e+00 : f32
    %151 = vector.broadcast %cst_52 : f32 to vector<16x64xf32>
    %152 = arith.maximumf %150, %151 : vector<16x64xf32>
    %153 = arith.truncf %152 : vector<16x64xf32> to vector<16x64xbf16>
    %cst_53 = arith.constant dense<0.000000e+00> : vector<16x32xf32>
    %154 = tpu.matmul %153, %16, %cst_53 {dimension_numbers = #tpu.dot_dimension_numbers<[1], [0], [0], [1], [0, 0, 1, 1], [], []>} : vector<16x64xbf16>, vector<64x32xbf16>, vector<16x32xf32> -> vector<16x32xf32>
    %155 = vector.broadcast %17 : vector<1x32xf32> to vector<16x32xf32>
    %156 = arith.addf %154, %155 : vector<16x32xf32>
    %157 = arith.addf %123, %156 : vector<16x32xf32>
    %cst_54 = arith.constant dense<0.000000e+00> : vector<16xf32>
    %158 = vector.multi_reduction <add>, %157, %cst_54 [1] : vector<16x32xf32> to vector<16xf32>
    %159 = vector.shape_cast %158 : vector<16xf32> to vector<16x1xf32>
    %cst_55 = arith.constant 3.200000e+01 : f32
    %160 = vector.broadcast %cst_55 : f32 to vector<16x1xf32>
    %161 = arith.divf %159, %160 : vector<16x1xf32>
    %162 = vector.broadcast %161 : vector<16x1xf32> to vector<16x32xf32>
    %163 = arith.subf %157, %162 : vector<16x32xf32>
    %164 = arith.mulf %163, %163 : vector<16x32xf32>
    %cst_56 = arith.constant dense<0.000000e+00> : vector<16xf32>
    %165 = vector.multi_reduction <add>, %164, %cst_56 [1] : vector<16x32xf32> to vector<16xf32>
    %166 = vector.shape_cast %165 : vector<16xf32> to vector<16x1xf32>
    %cst_57 = arith.constant 0.0322580636 : f32
    %167 = vector.broadcast %cst_57 : f32 to vector<16x1xf32>
    %168 = arith.mulf %166, %167 : vector<16x1xf32>
    %169 = math.sqrt %168 : vector<16x1xf32>
    %cst_58 = arith.constant 9.99999997E-7 : f32
    %170 = vector.broadcast %cst_58 : f32 to vector<16x1xf32>
    %171 = arith.addf %169, %170 : vector<16x1xf32>
    %172 = tpu.reciprocal %171 {approx = true} : vector<16x1xf32> -> vector<16x1xf32>
    %173 = vector.broadcast %161 : vector<16x1xf32> to vector<16x32xf32>
    %174 = arith.subf %157, %173 : vector<16x32xf32>
    %175 = vector.broadcast %6 : vector<1x32xf32> to vector<16x32xf32>
    %176 = arith.mulf %175, %174 : vector<16x32xf32>
    %177 = vector.broadcast %172 : vector<16x1xf32> to vector<16x32xf32>
    %178 = arith.mulf %176, %177 : vector<16x32xf32>
    %179 = vector.broadcast %7 : vector<1x32xf32> to vector<16x32xf32>
    %180 = arith.addf %178, %179 : vector<16x32xf32>
    %181 = arith.truncf %180 : vector<16x32xf32> to vector<16x32xbf16>
    %cst_59 = arith.constant dense<0.000000e+00> : vector<16x96xf32>
    %182 = tpu.matmul %181, %10, %cst_59 {dimension_numbers = #tpu.dot_dimension_numbers<[1], [0], [0], [1], [0, 0, 1, 1], [], []>} : vector<16x32xbf16>, vector<32x96xbf16>, vector<16x96xf32> -> vector<16x96xf32>
    %183 = vector.broadcast %11 : vector<1x96xf32> to vector<16x96xf32>
    %184 = arith.addf %182, %183 : vector<16x96xf32>
    %185 = vector.extract_strided_slice %184 {offsets = [0, 0], sizes = [16, 8], strides = [1, 1]} : vector<16x96xf32> to vector<16x8xf32>
    %186 = vector.shape_cast %185 : vector<16x8xf32> to vector<2x8x8xf32>
    %187 = vector.extract_strided_slice %184 {offsets = [0, 8], sizes = [16, 8], strides = [1, 1]} : vector<16x96xf32> to vector<16x8xf32>
    %188 = vector.shape_cast %187 : vector<16x8xf32> to vector<2x8x8xf32>
    %189 = vector.extract_strided_slice %184 {offsets = [0, 16], sizes = [16, 8], strides = [1, 1]} : vector<16x96xf32> to vector<16x8xf32>
    %190 = vector.shape_cast %189 : vector<16x8xf32> to vector<2x8x8xf32>
    %191 = vector.extract_strided_slice %184 {offsets = [0, 24], sizes = [16, 8], strides = [1, 1]} : vector<16x96xf32> to vector<16x8xf32>
    %192 = vector.shape_cast %191 : vector<16x8xf32> to vector<2x8x8xf32>
    %193 = tpu.concatenate %186, %188, %190, %192 in 0 : vector<2x8x8xf32>, vector<2x8x8xf32>, vector<2x8x8xf32>, vector<2x8x8xf32> -> vector<8x8x8xf32>
    %194 = arith.truncf %193 : vector<8x8x8xf32> to vector<8x8x8xbf16>
    %195 = vector.extract_strided_slice %184 {offsets = [0, 32], sizes = [16, 8], strides = [1, 1]} : vector<16x96xf32> to vector<16x8xf32>
    %196 = vector.shape_cast %195 : vector<16x8xf32> to vector<2x8x8xf32>
    %197 = vector.extract_strided_slice %184 {offsets = [0, 40], sizes = [16, 8], strides = [1, 1]} : vector<16x96xf32> to vector<16x8xf32>
    %198 = vector.shape_cast %197 : vector<16x8xf32> to vector<2x8x8xf32>
    %199 = vector.extract_strided_slice %184 {offsets = [0, 48], sizes = [16, 8], strides = [1, 1]} : vector<16x96xf32> to vector<16x8xf32>
    %200 = vector.shape_cast %199 : vector<16x8xf32> to vector<2x8x8xf32>
    %201 = vector.extract_strided_slice %184 {offsets = [0, 56], sizes = [16, 8], strides = [1, 1]} : vector<16x96xf32> to vector<16x8xf32>
    %202 = vector.shape_cast %201 : vector<16x8xf32> to vector<2x8x8xf32>
    %203 = tpu.concatenate %196, %198, %200, %202 in 0 : vector<2x8x8xf32>, vector<2x8x8xf32>, vector<2x8x8xf32>, vector<2x8x8xf32> -> vector<8x8x8xf32>
    %204 = arith.truncf %203 : vector<8x8x8xf32> to vector<8x8x8xbf16>
    %205 = vector.extract_strided_slice %184 {offsets = [0, 64], sizes = [16, 8], strides = [1, 1]} : vector<16x96xf32> to vector<16x8xf32>
    %206 = vector.shape_cast %205 : vector<16x8xf32> to vector<2x8x8xf32>
    %207 = vector.extract_strided_slice %184 {offsets = [0, 72], sizes = [16, 8], strides = [1, 1]} : vector<16x96xf32> to vector<16x8xf32>
    %208 = vector.shape_cast %207 : vector<16x8xf32> to vector<2x8x8xf32>
    %209 = vector.extract_strided_slice %184 {offsets = [0, 80], sizes = [16, 8], strides = [1, 1]} : vector<16x96xf32> to vector<16x8xf32>
    %210 = vector.shape_cast %209 : vector<16x8xf32> to vector<2x8x8xf32>
    %211 = vector.extract_strided_slice %184 {offsets = [0, 88], sizes = [16, 8], strides = [1, 1]} : vector<16x96xf32> to vector<16x8xf32>
    %212 = vector.shape_cast %211 : vector<16x8xf32> to vector<2x8x8xf32>
    %213 = tpu.concatenate %206, %208, %210, %212 in 0 : vector<2x8x8xf32>, vector<2x8x8xf32>, vector<2x8x8xf32>, vector<2x8x8xf32> -> vector<8x8x8xf32>
    %214 = arith.truncf %213 : vector<8x8x8xf32> to vector<8x8x8xbf16>
    "tpu.trace_start"() <{level = 10 : i32, message = "gqd,gkd->gqk"}> : () -> ()
    %cst_60 = arith.constant dense<0.000000e+00> : vector<8x8x8xf32>
    %215 = tpu.matmul %194, %204, %cst_60 {dimension_numbers = #tpu.dot_dimension_numbers<[2], [2], [1], [1], [0, 0, 0, 1, 1, 1], [0], [0]>} : vector<8x8x8xbf16>, vector<8x8x8xbf16>, vector<8x8x8xf32> -> vector<8x8x8xf32>
    "tpu.trace_stop"() : () -> ()
    %cst_61 = arith.constant 0.353553385 : f32
    %216 = vector.broadcast %cst_61 : f32 to vector<8x8x8xf32>
    %217 = arith.mulf %215, %216 : vector<8x8x8xf32>
    %cst_62 = arith.constant -1.000000e+09 : f32
    %218 = vector.shape_cast %5 : vector<8x1x8xi1> to vector<8x1x8xi1>
    %219 = vector.broadcast %218 : vector<8x1x8xi1> to vector<8x8x8xi1>
    %220 = vector.broadcast %cst_62 : f32 to vector<8x8x8xf32>
    %221 = arith.select %219, %220, %217 : vector<8x8x8xi1>, vector<8x8x8xf32>
    %cst_63 = arith.constant dense<0xFF800000> : vector<8x8xf32>
    %222 = vector.multi_reduction <maximumf>, %221, %cst_63 [2] : vector<8x8x8xf32> to vector<8x8xf32>
    %223 = vector.shape_cast %222 : vector<8x8xf32> to vector<8x8x1xf32>
    %224 = vector.broadcast %223 : vector<8x8x1xf32> to vector<8x8x8xf32>
    %225 = arith.subf %221, %224 : vector<8x8x8xf32>
    %226 = math.exp %225 : vector<8x8x8xf32>
    %cst_64 = arith.constant dense<0.000000e+00> : vector<8x8xf32>
    %227 = vector.multi_reduction <add>, %226, %cst_64 [2] : vector<8x8x8xf32> to vector<8x8xf32>
    %228 = vector.shape_cast %227 : vector<8x8xf32> to vector<8x8x1xf32>
    %229 = tpu.reciprocal %228 {approx = true} : vector<8x8x1xf32> -> vector<8x8x1xf32>
    %230 = vector.broadcast %229 : vector<8x8x1xf32> to vector<8x8x8xf32>
    %231 = arith.mulf %226, %230 : vector<8x8x8xf32>
    %232 = arith.truncf %231 : vector<8x8x8xf32> to vector<8x8x8xbf16>
    "tpu.trace_start"() <{level = 10 : i32, message = "gqk,gkd->gqd"}> : () -> ()
    %cst_65 = arith.constant dense<0.000000e+00> : vector<8x8x8xf32>
    %233 = tpu.matmul %232, %214, %cst_65 {dimension_numbers = #tpu.dot_dimension_numbers<[2], [1], [1], [2], [0, 0, 0, 1, 1, 2], [0], [0]>} : vector<8x8x8xbf16>, vector<8x8x8xbf16>, vector<8x8x8xf32> -> vector<8x8x8xf32>
    "tpu.trace_stop"() : () -> ()
    %234 = vector.extract_strided_slice %233 {offsets = [0, 0, 0], sizes = [2, 8, 8], strides = [1, 1, 1]} : vector<8x8x8xf32> to vector<2x8x8xf32>
    %235 = vector.shape_cast %234 : vector<2x8x8xf32> to vector<16x8xf32>
    %236 = arith.truncf %235 : vector<16x8xf32> to vector<16x8xbf16>
    %237 = vector.extract_strided_slice %12 {offsets = [0, 0, 0], sizes = [1, 8, 32], strides = [1, 1, 1]} : vector<4x8x32xbf16> to vector<1x8x32xbf16>
    %238 = vector.shape_cast %237 : vector<1x8x32xbf16> to vector<8x32xbf16>
    %cst_66 = arith.constant dense<0.000000e+00> : vector<16x32xf32>
    %239 = tpu.matmul %236, %238, %cst_66 {dimension_numbers = #tpu.dot_dimension_numbers<[1], [0], [0], [1], [0, 0, 1, 1], [], []>} : vector<16x8xbf16>, vector<8x32xbf16>, vector<16x32xf32> -> vector<16x32xf32>
    %240 = vector.broadcast %13 : vector<1x32xf32> to vector<16x32xf32>
    %241 = arith.addf %240, %239 : vector<16x32xf32>
    %242 = vector.extract_strided_slice %233 {offsets = [2, 0, 0], sizes = [2, 8, 8], strides = [1, 1, 1]} : vector<8x8x8xf32> to vector<2x8x8xf32>
    %243 = vector.shape_cast %242 : vector<2x8x8xf32> to vector<16x8xf32>
    %244 = arith.truncf %243 : vector<16x8xf32> to vector<16x8xbf16>
    %245 = vector.extract_strided_slice %12 {offsets = [1, 0, 0], sizes = [1, 8, 32], strides = [1, 1, 1]} : vector<4x8x32xbf16> to vector<1x8x32xbf16>
    %246 = vector.shape_cast %245 : vector<1x8x32xbf16> to vector<8x32xbf16>
    %cst_67 = arith.constant dense<0.000000e+00> : vector<16x32xf32>
    %247 = tpu.matmul %244, %246, %cst_67 {dimension_numbers = #tpu.dot_dimension_numbers<[1], [0], [0], [1], [0, 0, 1, 1], [], []>} : vector<16x8xbf16>, vector<8x32xbf16>, vector<16x32xf32> -> vector<16x32xf32>
    %248 = arith.addf %241, %247 : vector<16x32xf32>
    %249 = vector.extract_strided_slice %233 {offsets = [4, 0, 0], sizes = [2, 8, 8], strides = [1, 1, 1]} : vector<8x8x8xf32> to vector<2x8x8xf32>
    %250 = vector.shape_cast %249 : vector<2x8x8xf32> to vector<16x8xf32>
    %251 = arith.truncf %250 : vector<16x8xf32> to vector<16x8xbf16>
    %252 = vector.extract_strided_slice %12 {offsets = [2, 0, 0], sizes = [1, 8, 32], strides = [1, 1, 1]} : vector<4x8x32xbf16> to vector<1x8x32xbf16>
    %253 = vector.shape_cast %252 : vector<1x8x32xbf16> to vector<8x32xbf16>
    %cst_68 = arith.constant dense<0.000000e+00> : vector<16x32xf32>
    %254 = tpu.matmul %251, %253, %cst_68 {dimension_numbers = #tpu.dot_dimension_numbers<[1], [0], [0], [1], [0, 0, 1, 1], [], []>} : vector<16x8xbf16>, vector<8x32xbf16>, vector<16x32xf32> -> vector<16x32xf32>
    %255 = arith.addf %248, %254 : vector<16x32xf32>
    %256 = vector.extract_strided_slice %233 {offsets = [6, 0, 0], sizes = [2, 8, 8], strides = [1, 1, 1]} : vector<8x8x8xf32> to vector<2x8x8xf32>
    %257 = vector.shape_cast %256 : vector<2x8x8xf32> to vector<16x8xf32>
    %258 = arith.truncf %257 : vector<16x8xf32> to vector<16x8xbf16>
    %259 = vector.extract_strided_slice %12 {offsets = [3, 0, 0], sizes = [1, 8, 32], strides = [1, 1, 1]} : vector<4x8x32xbf16> to vector<1x8x32xbf16>
    %260 = vector.shape_cast %259 : vector<1x8x32xbf16> to vector<8x32xbf16>
    %cst_69 = arith.constant dense<0.000000e+00> : vector<16x32xf32>
    %261 = tpu.matmul %258, %260, %cst_69 {dimension_numbers = #tpu.dot_dimension_numbers<[1], [0], [0], [1], [0, 0, 1, 1], [], []>} : vector<16x8xbf16>, vector<8x32xbf16>, vector<16x32xf32> -> vector<16x32xf32>
    %262 = arith.addf %255, %261 : vector<16x32xf32>
    %263 = arith.addf %157, %262 : vector<16x32xf32>
    %cst_70 = arith.constant dense<0.000000e+00> : vector<16xf32>
    %264 = vector.multi_reduction <add>, %263, %cst_70 [1] : vector<16x32xf32> to vector<16xf32>
    %265 = vector.shape_cast %264 : vector<16xf32> to vector<16x1xf32>
    %cst_71 = arith.constant 3.200000e+01 : f32
    %266 = vector.broadcast %cst_71 : f32 to vector<16x1xf32>
    %267 = arith.divf %265, %266 : vector<16x1xf32>
    %268 = vector.broadcast %267 : vector<16x1xf32> to vector<16x32xf32>
    %269 = arith.subf %263, %268 : vector<16x32xf32>
    %270 = arith.mulf %269, %269 : vector<16x32xf32>
    %cst_72 = arith.constant dense<0.000000e+00> : vector<16xf32>
    %271 = vector.multi_reduction <add>, %270, %cst_72 [1] : vector<16x32xf32> to vector<16xf32>
    %272 = vector.shape_cast %271 : vector<16xf32> to vector<16x1xf32>
    %cst_73 = arith.constant 0.0322580636 : f32
    %273 = vector.broadcast %cst_73 : f32 to vector<16x1xf32>
    %274 = arith.mulf %272, %273 : vector<16x1xf32>
    %275 = math.sqrt %274 : vector<16x1xf32>
    %cst_74 = arith.constant 9.99999997E-7 : f32
    %276 = vector.broadcast %cst_74 : f32 to vector<16x1xf32>
    %277 = arith.addf %275, %276 : vector<16x1xf32>
    %278 = tpu.reciprocal %277 {approx = true} : vector<16x1xf32> -> vector<16x1xf32>
    %279 = vector.broadcast %267 : vector<16x1xf32> to vector<16x32xf32>
    %280 = arith.subf %263, %279 : vector<16x32xf32>
    %281 = vector.broadcast %8 : vector<1x32xf32> to vector<16x32xf32>
    %282 = arith.mulf %281, %280 : vector<16x32xf32>
    %283 = vector.broadcast %278 : vector<16x1xf32> to vector<16x32xf32>
    %284 = arith.mulf %282, %283 : vector<16x32xf32>
    %285 = vector.broadcast %9 : vector<1x32xf32> to vector<16x32xf32>
    %286 = arith.addf %284, %285 : vector<16x32xf32>
    %287 = arith.truncf %286 : vector<16x32xf32> to vector<16x32xbf16>
    %cst_75 = arith.constant dense<0.000000e+00> : vector<16x64xf32>
    %288 = tpu.matmul %287, %14, %cst_75 {dimension_numbers = #tpu.dot_dimension_numbers<[1], [0], [0], [1], [0, 0, 1, 1], [], []>} : vector<16x32xbf16>, vector<32x64xbf16>, vector<16x64xf32> -> vector<16x64xf32>
    %289 = vector.broadcast %15 : vector<1x64xf32> to vector<16x64xf32>
    %290 = arith.addf %288, %289 : vector<16x64xf32>
    %cst_76 = arith.constant 0.000000e+00 : f32
    %291 = vector.broadcast %cst_76 : f32 to vector<16x64xf32>
    %292 = arith.maximumf %290, %291 : vector<16x64xf32>
    %293 = arith.truncf %292 : vector<16x64xf32> to vector<16x64xbf16>
    %cst_77 = arith.constant dense<0.000000e+00> : vector<16x32xf32>
    %294 = tpu.matmul %293, %16, %cst_77 {dimension_numbers = #tpu.dot_dimension_numbers<[1], [0], [0], [1], [0, 0, 1, 1], [], []>} : vector<16x64xbf16>, vector<64x32xbf16>, vector<16x32xf32> -> vector<16x32xf32>
    %295 = vector.broadcast %17 : vector<1x32xf32> to vector<16x32xf32>
    %296 = arith.addf %294, %295 : vector<16x32xf32>
    %297 = arith.addf %263, %296 : vector<16x32xf32>
    %298 = vector.shape_cast %297 : vector<16x32xf32> to vector<2x8x32xf32>
    %c0_78 = arith.constant 0 : index
    %c0_79 = arith.constant 0 : index
    %c0_80 = arith.constant 0 : index
    %299 = vector.load %arg15[%c0_78, %c0_79, %c0_80] : memref<2x8x32xf32, #tpu.memory_space<vmem>>, vector<2x8x32xf32>
    tpu.vector_store %arg15[%c0_78, %c0_79, %c0_80], %298 {strides = array<i32>} : memref<2x8x32xf32, #tpu.memory_space<vmem>>, vector<2x8x32xf32>,
    return
  }
  func.func @transform_0(%arg0: i32) -> (i32, i32, i32) {
    %c0_i32 = arith.constant 0 : i32
    %c0_i32_0 = arith.constant 0 : i32
    %c0_i32_1 = arith.constant 0 : i32
    return %arg0, %c0_i32, %c0_i32_0 : i32, i32, i32
  }
  func.func @transform_1(%arg0: i32) -> (i32, i32, i32) {
    %c0_i32 = arith.constant 0 : i32
    %c0_i32_0 = arith.constant 0 : i32
    %c0_i32_1 = arith.constant 0 : i32
    return %arg0, %c0_i32, %c0_i32_0 : i32, i32, i32
  }
  func.func @transform_2(%arg0: i32) -> (i32, i32) {
    %c0_i32 = arith.constant 0 : i32
    %c0_i32_0 = arith.constant 0 : i32
    %c0_i32_1 = arith.constant 0 : i32
    return %c0_i32, %c0_i32_0 : i32, i32
  }
  func.func @transform_3(%arg0: i32) -> (i32, i32) {
    %c0_i32 = arith.constant 0 : i32
    %c0_i32_0 = arith.constant 0 : i32
    %c0_i32_1 = arith.constant 0 : i32
    return %c0_i32, %c0_i32_0 : i32, i32
  }
  func.func @transform_4(%arg0: i32) -> (i32, i32) {
    %c0_i32 = arith.constant 0 : i32
    %c0_i32_0 = arith.constant 0 : i32
    %c0_i32_1 = arith.constant 0 : i32
    return %c0_i32, %c0_i32_0 : i32, i32
  }
  func.func @transform_5(%arg0: i32) -> (i32, i32) {
    %c0_i32 = arith.constant 0 : i32
    %c0_i32_0 = arith.constant 0 : i32
    %c0_i32_1 = arith.constant 0 : i32
    return %c0_i32, %c0_i32_0 : i32, i32
  }
  func.func @transform_6(%arg0: i32) -> (i32, i32, i32) {
    %c0_i32 = arith.constant 0 : i32
    %c0_i32_0 = arith.constant 0 : i32
    %c0_i32_1 = arith.constant 0 : i32
    %c0_i32_2 = arith.constant 0 : i32
    return %c0_i32, %c0_i32_0, %c0_i32_1 : i32, i32, i32
  }
  func.func @transform_7(%arg0: i32) -> (i32, i32) {
    %c0_i32 = arith.constant 0 : i32
    %c0_i32_0 = arith.constant 0 : i32
    %c0_i32_1 = arith.constant 0 : i32
    return %c0_i32, %c0_i32_0 : i32, i32
  }
  func.func @transform_8(%arg0: i32) -> (i32, i32) {
    %c0_i32 = arith.constant 0 : i32
    %c0_i32_0 = arith.constant 0 : i32
    %c0_i32_1 = arith.constant 0 : i32
    return %c0_i32, %c0_i32_0 : i32, i32
  }
  func.func @transform_9(%arg0: i32) -> (i32, i32) {
    %c0_i32 = arith.constant 0 : i32
    %c0_i32_0 = arith.constant 0 : i32
    %c0_i32_1 = arith.constant 0 : i32
    return %c0_i32, %c0_i32_0 : i32, i32
  }
  func.func @transform_10(%arg0: i32) -> (i32, i32) {
    %c0_i32 = arith.constant 0 : i32
    %c0_i32_0 = arith.constant 0 : i32
    %c0_i32_1 = arith.constant 0 : i32
    return %c0_i32, %c0_i32_0 : i32, i32
  }
  func.func @transform_11(%arg0: i32) -> (i32, i32) {
    %c0_i32 = arith.constant 0 : i32
    %c0_i32_0 = arith.constant 0 : i32
    %c0_i32_1 = arith.constant 0 : i32
    return %c0_i32, %c0_i32_0 : i32, i32
  }
  func.func @transform_12(%arg0: i32) -> (i32, i32) {
    %c0_i32 = arith.constant 0 : i32
    %c0_i32_0 = arith.constant 0 : i32
    %c0_i32_1 = arith.constant 0 : i32
    return %c0_i32, %c0_i32_0 : i32, i32
  }
  func.func @transform_13(%arg0: i32) -> (i32, i32) {
    %c0_i32 = arith.constant 0 : i32
    %c0_i32_0 = arith.constant 0 : i32
    %c0_i32_1 = arith.constant 0 : i32
    return %c0_i32, %c0_i32_0 : i32, i32
  }
  func.func @transform_14(%arg0: i32) -> (i32, i32, i32) {
    %c0_i32 = arith.constant 0 : i32
    %c0_i32_0 = arith.constant 0 : i32
    %c0_i32_1 = arith.constant 0 : i32
    return %arg0, %c0_i32, %c0_i32_0 : i32, i32, i32
  }
}

</mosaic_0001>

<bundles_post_ra>
// kernel: tpu_custom_call.1
= control target key start
LH: loop header
LB: loop body
LE: loop exit
PB: predicated region body
PF: predicated region fallthrough
CT: control target
= control target key end

     0   :  { %19 = vsyncpa [#allocation3], 0  ;;  %s4589_s0 = inlined_call_operand.vmem [shape: f32[2,8,32], index: 0, kind: input, shape index: {}]   ;;  %s4590_s1 = inlined_call_operand.vmem [shape: f32[2,1,8], index: 1, kind: input, shape index: {}]   ;;  %s4591_s2 = inlined_call_operand.hbm [shape: f32[1,32], index: 2, kind: input, shape index: {}]   ;;  %s4592_s3 = inlined_call_operand.hbm [shape: f32[1,32], index: 3, kind: input, shape index: {}]   ;;  %s4593_s4 = inlined_call_operand.vmem [shape: bf16[32,96], index: 4, kind: input, shape index: {}]   ;;  %s4594_s5 = inlined_call_operand.hbm [shape: f32[1,96], index: 5, kind: input, shape index: {}]   ;;  %s4595_s6 = inlined_call_operand.vmem [shape: bf16[4,8,32], index: 6, kind: input, shape index: {}]   ;;  %s4596_s7 = inlined_call_operand.hbm [shape: f32[1,32], index: 7, kind: input, shape index: {}]   ;;  %s4597_s8 = inlined_call_operand.hbm [shape: f32[1,32], index: 8, kind: input, shape index: {}]   ;;  %s4598_s9 = inlined_call_operand.hbm [shape: f32[1,32], index: 9, kind: input, shape index: {}]   ;;  %s4599_s10 = inlined_call_operand.vmem [shape: bf16[32,64], index: 10, kind: input, shape index: {}]   ;;  %s4600_s11 = inlined_call_operand.vmem [shape: f32[1,64], index: 11, kind: input, shape index: {}]   ;;  %s4601_s12 = inlined_call_operand.vmem [shape: bf16[64,32], index: 12, kind: input, shape index: {}]   ;;  %s4602_s13 = inlined_call_operand.vmem [shape: f32[1,32], index: 13, kind: input, shape index: {}]   ;;  %s4603_s14 = inlined_call_operand.hbm [shape: f32[2,8,32], index: 14, kind: output, shape index: {}]  }
   0x1   :  { %20 = vsyncpa [#allocation6], 0 }
   0x2   :  { %21 = vsyncpa [#allocation9], 0 }
   0x3   :  { %22 = vsyncpa [#allocation12], 0 }
   0x4   :  { %23 = vsyncpa [#allocation4], 0  ;;  %s3751_s29 = smov [#allocation5]   ;;  %s3752_s15 = smov [#allocation8]  }
   0x5   :  { %s44_s30 = sshll.u32 %s3751_s29, 4  ;;  %s68_s16 = sshll.u32 %s3752_s15, 4  ;;  %s45_s30 = int_to_ptr.vmem [resolvable:$true] %s44_s30  ;;  %s69_s16 = int_to_ptr.vmem [resolvable:$true] %s68_s16 }
   0x6   :  { %s3587_s19 = scalar_lea.hbm %s4592_s3, 16 }
   0x7   :  { %p3588_p0 = scmp.ne.s32.totalorder %s4592_s3, %s3587_s19  ;;  %p3591_p1 = scmp.lt.u32.totalorder %s3587_s19, %s4592_s3 }
   0x9   :  { %p3593_p2 = pnand %p3591_p1, %p3588_p0 }
   0xb   :  { %3596 = shalt.err (!%p3593_p2)
}
   0xc   :  { %s3597_s24 = scalar_lea.vmem %s45_s30, 16  ;;  %s3601_s25 = scalar_lea.vmem %s45_s30, 32 }
   0xd   :  { %p3598_p3 = scmp.ne.s32.totalorder %s45_s30, %s3597_s24  ;;  %p3602_p4 = scmp.lt.s32.totalorder %s45_s30, %s45_s30 }
   0xe   :  { %p3603_p5 = scmp.lt.s32.totalorder %s3601_s25, %s3597_s24 }
  0x10   :  { %p3604_p6 = por %p3603_p5, %p3602_p4 }
  0x12   :  { %p3605_p7 = pnand %p3604_p6, %p3598_p3 }
  0x14   :  { %3608 = shalt.err (!%p3605_p7)
}
  0x15   :  { %47 = dma.hbm_to_vmem [thread:$0]  %s4592_s3, 16, %s45_s30, [#allocation6]  }
  0x16   :  { %s3609_s15 = scalar_lea.hbm %s4596_s7, 16 }
  0x17   :  { %p3610_p8 = scmp.ne.s32.totalorder %s4596_s7, %s3609_s15  ;;  %p3613_p9 = scmp.lt.u32.totalorder %s3609_s15, %s4596_s7 }
  0x19   :  { %p3615_p10 = pnand %p3613_p9, %p3610_p8 }
  0x1b   :  { %3618 = shalt.err (!%p3615_p10)
}
  0x1c   :  { %s3619_s21 = scalar_lea.vmem %s69_s16, 16  ;;  %s3623_s22 = scalar_lea.vmem %s69_s16, 32 }
  0x1d   :  { %p3620_p11 = scmp.ne.s32.totalorder %s69_s16, %s3619_s21  ;;  %p3624_p12 = scmp.lt.s32.totalorder %s69_s16, %s69_s16 }
  0x1e   :  { %p3625_p13 = scmp.lt.s32.totalorder %s3623_s22, %s3619_s21 }
  0x20   :  { %p3626_p0 = por %p3625_p13, %p3624_p12 }
  0x22   :  { %p3627_p1 = pnand %p3626_p0, %p3620_p11 }
  0x24   :  { %3630 = shalt.err (!%p3627_p1)
}
  0x25   :  { %71 = dma.hbm_to_vmem [thread:$0]  %s4596_s7, 16, %s69_s16, [#allocation9]  }
  0x26   :  { %s3753_s23 = smov [#allocation2]   ;;  %s3754_s25 = smov [#allocation7]  }
  0x27   :  { %s34_s24 = sshll.u32 %s3753_s23, 4  ;;  %s56_s26 = sshll.u32 %s3754_s25, 4  ;;  %s35_s24 = int_to_ptr.vmem [resolvable:$true] %s34_s24  ;;  %s57_s26 = int_to_ptr.vmem [resolvable:$true] %s56_s26 }
  0x28   :  { %s3631_s29 = scalar_lea.hbm %s4591_s2, 16 }
  0x29   :  { %p3632_p2 = scmp.ne.s32.totalorder %s4591_s2, %s3631_s29  ;;  %p3635_p3 = scmp.lt.u32.totalorder %s3631_s29, %s4591_s2 }
  0x2b   :  { %p3637_p4 = pnand %p3635_p3, %p3632_p2 }
  0x2d   :  { %3640 = shalt.err (!%p3637_p4)
}
  0x2e   :  { %s3641_s7 = scalar_lea.vmem %s35_s24, 16  ;;  %s3645_s16 = scalar_lea.vmem %s35_s24, 32 }
  0x2f   :  { %p3642_p5 = scmp.ne.s32.totalorder %s35_s24, %s3641_s7  ;;  %p3646_p6 = scmp.lt.s32.totalorder %s35_s24, %s35_s24 }
  0x30   :  { %p3647_p7 = scmp.lt.s32.totalorder %s3645_s16, %s3641_s7 }
  0x32   :  { %p3648_p8 = por %p3647_p7, %p3646_p6 }
  0x34   :  { %p3649_p9 = pnand %p3648_p8, %p3642_p5 }
  0x36   :  { %3652 = shalt.err (!%p3649_p9)
}
  0x37   :  { %37 = dma.hbm_to_vmem [thread:$0]  %s4591_s2, 16, %s35_s24, [#allocation3]  }
  0x38   :  { %s3653_s30 = scalar_lea.hbm %s4594_s5, 16 }
  0x39   :  { %p3654_p10 = scmp.ne.s32.totalorder %s4594_s5, %s3653_s30  ;;  %p3657_p11 = scmp.lt.u32.totalorder %s3653_s30, %s4594_s5 }
  0x3b   :  { %p3659_p12 = pnand %p3657_p11, %p3654_p10 }
  0x3d   :  { %3662 = shalt.err (!%p3659_p12)
}
  0x3e   :  { %s3663_s29 = scalar_lea.vmem %s57_s26, 16  ;;  %s3667_s15 = scalar_lea.vmem %s57_s26, 32 }
  0x3f   :  { %p3664_p13 = scmp.ne.s32.totalorder %s57_s26, %s3663_s29  ;;  %p3668_p0 = scmp.lt.s32.totalorder %s57_s26, %s57_s26 }
  0x40   :  { %p3669_p1 = scmp.lt.s32.totalorder %s3667_s15, %s3663_s29 }
  0x42   :  { %p3670_p2 = por %p3669_p1, %p3668_p0 }
  0x44   :  { %p3671_p3 = pnand %p3670_p2, %p3664_p13 }
  0x46   :  { %3674 = shalt.err (!%p3671_p3)
}
  0x47   :  { %59 = dma.hbm_to_vmem [thread:$0]  %s4594_s5, 16, %s57_s26, [#allocation6]  }
  0x48   :  { %s3755_s17 = smov [#allocation10]   ;;  %s3756_s19 = smov [#allocation11]  }
  0x49   :  { %s78_s18 = sshll.u32 %s3755_s17, 4  ;;  %s88_s7 = sshll.u32 %s3756_s19, 4  ;;  %s79_s18 = int_to_ptr.vmem [resolvable:$true] %s78_s18  ;;  %s89_s7 = int_to_ptr.vmem [resolvable:$true] %s88_s7 }
  0x4a   :  { %s3675_s21 = scalar_lea.hbm %s4597_s8, 16 }
  0x4b   :  { %p3676_p4 = scmp.ne.s32.totalorder %s4597_s8, %s3675_s21  ;;  %p3679_p5 = scmp.lt.u32.totalorder %s3675_s21, %s4597_s8 }
  0x4d   :  { %p3681_p6 = pnand %p3679_p5, %p3676_p4 }
  0x4f   :  { %3684 = shalt.err (!%p3681_p6)
}
  0x50   :  { %s3685_s5 = scalar_lea.vmem %s79_s18, 16  ;;  %s3689_s26 = scalar_lea.vmem %s79_s18, 32 }
  0x51   :  { %p3686_p7 = scmp.ne.s32.totalorder %s79_s18, %s3685_s5  ;;  %p3690_p8 = scmp.lt.s32.totalorder %s79_s18, %s79_s18 }
  0x52   :  { %p3691_p9 = scmp.lt.s32.totalorder %s3689_s26, %s3685_s5 }
  0x54   :  { %p3692_p10 = por %p3691_p9, %p3690_p8 }
  0x56   :  { %p3693_p11 = pnand %p3692_p10, %p3686_p7 }
  0x58   :  { %3696 = shalt.err (!%p3693_p11)
}
  0x59   :  { %81 = dma.hbm_to_vmem [thread:$0]  %s4597_s8, 16, %s79_s18, [#allocation9]  }
  0x5a   :  { %s3697_s15 = scalar_lea.hbm %s4598_s9, 16 }
  0x5b   :  { %p3698_p12 = scmp.ne.s32.totalorder %s4598_s9, %s3697_s15  ;;  %p3701_p13 = scmp.lt.u32.totalorder %s3697_s15, %s4598_s9 }
  0x5d   :  { %p3703_p0 = pnand %p3701_p13, %p3698_p12 }
  0x5f   :  { %3706 = shalt.err (!%p3703_p0)
}
  0x60   :  { %s3707_s16 = scalar_lea.vmem %s89_s7, 16  ;;  %s3711_s20 = scalar_lea.vmem %s89_s7, 32 }
  0x61   :  { %p3708_p1 = scmp.ne.s32.totalorder %s89_s7, %s3707_s16  ;;  %p3712_p2 = scmp.lt.s32.totalorder %s89_s7, %s89_s7 }
  0x62   :  { %p3713_p3 = scmp.lt.s32.totalorder %s3711_s20, %s3707_s16 }
  0x64   :  { %p3714_p4 = por %p3713_p3, %p3712_p2 }
  0x66   :  { %p3715_p5 = pnand %p3714_p4, %p3708_p1 }
  0x68   :  { %3718 = shalt.err (!%p3715_p5)
}
  0x69   :  { %91 = dma.hbm_to_vmem [thread:$0]  %s4598_s9, 16, %s89_s7, [#allocation12]  }
  0x6a   :  { %3741 = dma.done.wait [#allocation3], 16  }
  0x6b   :  { %3742 = vsyncadd [#allocation3], 4294967280 }
  0x6c   :  { %3743 = dma.done.wait [#allocation6], 32  }
  0x6d   :  { %3744 = vsyncadd [#allocation6], 4294967264 }
  0x6e   :  { %3745 = dma.done.wait [#allocation9], 32  }
  0x6f   :  { %3746 = vsyncadd [#allocation9], 4294967264 }
  0x70   :  { %3747 = dma.done.wait [#allocation12], 16  }
  0x71   :  { %3748 = vsyncadd [#allocation12], 4294967280  ;;  %vm153_vm0 = vcmask 261120   ;;  %v3918_v0 = vld [vmem:[%s4589_s0] sm:$0xff]  ;;  %v3923_v1 = vld [vmem:[%s4589_s0 + $0x8] sm:$0xff]  ;;  %v3757_v15 = vmov 0.0  }
  0x72   :  { %v154_v2 = vsel %vm153_vm0, %v3918_v0, 0.0  ;;  %v157_v3 = vsel %vm153_vm0, %v3923_v1, 0.0  ;;  %v3473_v14 = vld [vmem:[%s4593_s4] sm:$0xff]   ;;  %3130 = vmatprep.subr.bf16.mxu1 %v3757_v15  ;;  %vm3758_vm1 = vmmov 0   ;;  %v3474_v16 = vld [vmem:[%s4593_s4 + $0x8] sm:$0xff]   ;;  %3144 = vmatprep.subr.bf16.mxu0 %v3757_v15  ;;  %s3759_s5 = smov 112  }
  0x73   :  { %155 = vadd.xlane.f32.xlu0 %v154_v2  ;;  %3134 = vmatprep.mubr.msk.bf16.mxu1 %vm3758_vm1, %v3757_v15  ;;  %v2966_v33 = vld [vmem:[#allocation2] ss:$0 sm:$0xff]  ;;  %v2967_v39 = vld [vmem:[#allocation5] ss:$0 sm:$0xff]  ;;  %v2968_v44 = vld [vmem:[#allocation7] ss:$0 sm:$0xff] }
  0x74   :  { %3131 = vmatpush3.bf16.msra.mxu1 %v3473_v14  ;;  %3146 = vmatprep.mubr.msk.bf16.mxu0 %vm3758_vm1, %v3757_v15  ;;  %s3760_s26 = smov 120   ;;  %s3761_s25 = smov 104   ;;  %vm305_vm6 = vcmask 64512   ;;  %vm824_vm7 = vcmask 1043456  }
  0x75   :  { %3132 = vmatprep.subr.bf16.mxu1 %v3757_v15  ;;  %s3762_s27 = smov 96   ;;  %s3763_s28 = smov 64  }
  0x77   :  { %158 = vadd.xlane.f32.xlu0 %v157_v3 }
  0x78   :  { %3133 = vmatpush3.bf16.msra.mxu1 %v3474_v16 }
  0x79   :  { %3138 = vmatprep.subr.bf16.mxu1 %v3757_v15 }
 0x100   :  { %v156_v4 = vpop.xlane.xlu0 %155 }
 0x101   :  { %v161_v5 = vmul.f32 0.03125, %v156_v4 }
 0x103   :  { %v163_v6 = vsub.f32 %v3918_v0, %v161_v5 }
 0x104   :  { %v159_v7 = vpop.xlane.xlu0 %158 }
 0x105   :  { %v162_v8 = vmul.f32 0.03125, %v159_v7  ;;  %v165_v9 = vmul.f32 %v163_v6, %v163_v6  ;;  %v199_v35 = vmul.f32 %v2966_v33, %v163_v6 }
 0x107   :  { %v164_v10 = vsub.f32 %v3923_v1, %v162_v8  ;;  %v167_v11 = vsel %vm153_vm0, %v165_v9, 0.0 }
 0x108   :  { %168 = vadd.xlane.f32.xlu1 %v167_v11 }
 0x109   :  { %v166_v12 = vmul.f32 %v164_v10, %v164_v10  ;;  %v200_v36 = vmul.f32 %v2966_v33, %v164_v10 }
 0x10b   :  { %v170_v13 = vsel %vm153_vm0, %v166_v12, 0.0 }
 0x10c   :  { %171 = vadd.xlane.f32.xlu1 %v170_v13 }
 0x195   :  { %v169_v17 = vpop.xlane.xlu1 %168 }
 0x196   :  { %v173_v18 = vmul.f32 0.032258064, %v169_v17 }
 0x198   :  { %3481 = vrsqrt.f32 %v173_v18  ;;  %vm177_vm2 = vcmp.eq.f32.partialorder %v173_v18, inf  ;;  %v180_v23 = vand.u32 2147483648, %v173_v18  ;;  %vm179_vm3 = vcmp.eq.f32.partialorder %v173_v18, 0.0 }
 0x199   :  { %v172_v19 = vpop.xlane.xlu1 %171 }
 0x19a   :  { %v174_v20 = vmul.f32 0.032258064, %v172_v19 }
 0x19c   :  { %3483 = vrsqrt.f32 %v174_v20  ;;  %vm184_vm4 = vcmp.eq.f32.partialorder %v174_v20, inf  ;;  %v187_v29 = vand.u32 2147483648, %v174_v20  ;;  %vm186_vm5 = vcmp.eq.f32.partialorder %v174_v20, 0.0 }
 0x1a2   :  { %v3482_v21 = vpop.eup %3481 }
 0x1a3   :  { %v176_v22 = vmul.f32 %v3482_v21, %v173_v18 }
 0x1a5   :  { %v178_v24 = vsel %vm177_vm2, %v173_v18, %v176_v22  ;;  %vm1564_vm2 = vcmask 523264  }
 0x1a6   :  { %v3484_v25 = vpop.eup %3483  ;;  %v181_v26 = vsel %vm179_vm3, %v180_v23, %v178_v24 }
 0x1a7   :  { %v189_v27 = vadd.f32 1e-06, %v181_v26  ;;  %v183_v28 = vmul.f32 %v3484_v25, %v174_v20  ;;  %v705_v26 = vlaneseq }
 0x1a9   :  { %3485 = vrcp.f32 %v189_v27  ;;  %v185_v30 = vsel %vm184_vm4, %v174_v20, %v183_v28  ;;  %v122_v27 = vld [vmem:[%s4590_s1 + $0x1] sm:$0x1]  ;;  %v706_v28 = vshrl.u32 %v705_v26, 7 }
 0x1aa   :  { %v188_v31 = vsel %vm186_vm5, %v187_v29, %v185_v30  ;;  %vm124_vm8 = vcmp.eq.f32.partialorder %v122_v27, 0.0  ;;  %v121_v29 = vld [vmem:[%s4590_s1] sm:$0x1] }
 0x1ab   :  { %v190_v32 = vadd.f32 1e-06, %v188_v31  ;;  %v707_v30 = vsub.s32 0, %v706_v28  ;;  %v3764_v31 = vmov 0   ;;  %vm123_vm9 = vcmp.eq.f32.partialorder %v121_v29, 0.0 }
 0x1ad   :  { %3487 = vrcp.f32 %v190_v32  ;;  %v704_v32 = vsel %vm124_vm8, 1, %v3764_v31 }
 0x1ae   :  { %v4038_v33 = vrot.slane %v704_v32, %v707_v30 }
 0x1b0   :  { %vm714_vm10 = vcmp.eq.s32.totalorder %v4038_v33, 1 }
 0x1b3   :  { %v3486_v34 = vpop.eup %3485 }
 0x1b4   :  { %v201_v37 = vmul.f32 %v3486_v34, %v199_v35  ;;  %v703_v34 = vsel %vm123_vm9, 1, %v3764_v31 }
 0x1b5   :  { %v4040_v35 = vrot.slane %v703_v34, %v707_v30 }
 0x1b6   :  { %v209_v41 = vadd.f32 %v2967_v39, %v201_v37 }
 0x1b7   :  { %v3488_v38 = vpop.eup %3487  ;;  %vm713_vm11 = vcmp.eq.s32.totalorder %v4040_v35, 1 }
 0x1b8   :  { %v202_v40 = vmul.f32 %v3488_v38, %v200_v36 }
 0x1ba   :  { %v210_v42 = vadd.f32 %v2967_v39, %v202_v40 }
 0x1bc   :  { %v211_v43 = vpack.c.bf16 %v210_v42, %v209_v41 }
 0x1be   :  { %3135 = vmatmul.mubr.msk.bf16.vlgmr.msra.gmra.mrb[0].mxu1 %vm153_vm0, %v211_v43 }
 0x1bf   :  { %3140 = vmatprep.mubr.msk.bf16.mxu1 %vm3758_vm1, %v3757_v15 }
 0x291   :  { %v267_v45 = vpop.f32.mrb[0].mxu1 }
 0x292   :  { %v3136_v46 = vpop.f32.mrb[1].mxu1  ;;  %v268_v48 = vadd.f32 %v2968_v44, %v267_v45 }
 0x293   :  { %v270_v47 = vpop.f32.mrb[2].mxu1 }
 0x294   :  { %v271_v49 = vadd.f32 %v2968_v44, %v270_v47  ;;  %v3137_v50 = vpop.f32.mrb[3].mxu1  ;;  %v294_v53 = vpack.c.bf16 %v268_v48, %v268_v48 }
 0x296   :  { %v3448_v51 = vpack.i.bf16 %v271_v49, %v268_v48  ;;  %v3952_v52 = vpack.c.bf16 %v271_v49, %v271_v49 }
 0x298   :  { %3449 = vrot.lane.b32.xlu1 %v3448_v51, %s3759_s5  ;;  %3444 = vrot.lane.b32.xlu0 %v3448_v51, %s3760_s26 }
 0x29c   :  { %3454 = vrot.lane.b32.xlu1 %v3448_v51, %s3761_s25  ;;  %353 = vrot.lane.b32.xlu0 %v3952_v52, %s3762_s27 }
 0x2a0   :  { %303 = vrot.lane.b32.xlu1 %v294_v53, %s3762_s27 }
 0x30a   :  { %v3450_v54 = vpop.permute.xlu1 %3449  ;;  %v3445_v55 = vpop.permute.xlu0 %3444 }
 0x30b   :  { %v3447_v56 = vunpack.i.h.bf16 %v3445_v55  ;;  %v3446_v57 = vunpack.i.l.bf16 %v3445_v55  ;;  %v3452_v58 = vunpack.i.h.bf16 %v3450_v54  ;;  %v3451_v59 = vunpack.i.l.bf16 %v3450_v54 }
 0x30d   :  { %v3958_v60 = vpack.c.bf16 %v3447_v56, %v3447_v56  ;;  %v3960_v61 = vpack.c.bf16 %v3446_v57, %v3446_v57  ;;  %v3967_v3 = vpack.c.bf16 %v3452_v58, %v3452_v58  ;;  %v3969_v4 = vpack.c.bf16 %v3451_v59, %v3451_v59 }
 0x30e   :  { %v3455_v62 = vpop.permute.xlu1 %3454  ;;  %v354_v63 = vpop.permute.xlu0 %353 }
 0x30f   :  { %402 = vrot.lane.b32.xlu1 %v3960_v61, %s3762_s27  ;;  %451 = vrot.lane.b32.xlu0 %v3958_v60, %s3762_s27  ;;  %v359_v2 = vsel %vm305_vm6, %v354_v63, 0  ;;  %v3457_v5 = vunpack.i.h.bf16 %v3455_v62  ;;  %v3456_v6 = vunpack.i.l.bf16 %v3455_v62 }
 0x310   :  { %3145 = vmatpush3.bf16.xpose.msra.mxu0 %v359_v2 }
 0x311   :  { %3156 = vmatprep.subr.bf16.mxu0 %v3757_v15  ;;  %v3977_v9 = vpack.c.bf16 %v3457_v5, %v3457_v5  ;;  %v3979_v10 = vpack.c.bf16 %v3456_v6, %v3456_v6 }
 0x312   :  { %v304_v7 = vpop.permute.xlu1 %303 }
 0x313   :  { %v310_v8 = vsel %vm305_vm6, %v304_v7, 0  ;;  %500 = vrot.lane.b32.xlu1 %v3969_v4, %s3762_s27  ;;  %549 = vrot.lane.b32.xlu0 %v3967_v3, %s3762_s27 }
 0x314   :  { %3139 = vmatpush3.bf16.xpose.msra.mxu1 %v310_v8 }
 0x315   :  { %3150 = vmatprep.subr.bf16.mxu1 %v3757_v15 }
 0x317   :  { %598 = vrot.lane.b32.xlu1 %v3979_v10, %s3762_s27  ;;  %647 = vrot.lane.b32.xlu0 %v3977_v9, %s3762_s27 }
 0x318   :  { %3147 = vmatmul.mubr.msk.bf16.vlgmr.msra.gmra.mrb[0].mxu0 %vm305_vm6, %v3952_v52 }
 0x319   :  { %3158 = vmatprep.mubr.msk.bf16.mxu0 %vm3758_vm1, %v3757_v15 }
 0x31b   :  { %3141 = vmatmul.mubr.msk.bf16.vlgmr.msra.gmra.mrb[4].mxu1 %vm305_vm6, %v294_v53  ;;  %819 = vrot.lane.b32.xlu1 %v294_v53, %s3763_s28 }
 0x31c   :  { %3152 = vmatprep.mubr.msk.bf16.mxu1 %vm3758_vm1, %v3757_v15 }
 0x381   :  { %v403_v11 = vpop.permute.xlu1 %402  ;;  %v452_v12 = vpop.permute.xlu0 %451 }
 0x382   :  { %v408_v13 = vsel %vm305_vm6, %v403_v11, 0  ;;  %v457_v14 = vsel %vm305_vm6, %v452_v12, 0 }
 0x383   :  { %3151 = vmatpush3.bf16.xpose.msra.mxu1 %v408_v13  ;;  %3157 = vmatpush3.bf16.xpose.msra.mxu0 %v457_v14 }
 0x384   :  { %3162 = vmatprep.subr.bf16.mxu1 %v3757_v15  ;;  %3168 = vmatprep.subr.bf16.mxu0 %v3757_v15 }
 0x385   :  { %v501_v16 = vpop.permute.xlu1 %500  ;;  %v550_v17 = vpop.permute.xlu0 %549 }
 0x386   :  { %v506_v18 = vsel %vm305_vm6, %v501_v16, 0  ;;  %v555_v19 = vsel %vm305_vm6, %v550_v17, 0 }
 0x389   :  { %v599_v20 = vpop.permute.xlu1 %598  ;;  %v648_v21 = vpop.permute.xlu0 %647 }
 0x38a   :  { %3153 = vmatmul.mubr.msk.bf16.vlgmr.msra.gmra.mrb[8].mxu1 %vm305_vm6, %v3960_v61  ;;  %3159 = vmatmul.mubr.msk.bf16.vlgmr.msra.gmra.mrb[4].mxu0 %vm305_vm6, %v3958_v60  ;;  %v604_v22 = vsel %vm305_vm6, %v599_v20, 0  ;;  %v653_v23 = vsel %vm305_vm6, %v648_v21, 0 }
 0x38b   :  { %3163 = vmatpush3.bf16.xpose.msra.mxu1 %v506_v18  ;;  %3169 = vmatpush3.bf16.xpose.msra.mxu0 %v555_v19 }
 0x38c   :  { %3164 = vmatprep.mubr.msk.bf16.mxu1 %vm3758_vm1, %v3757_v15  ;;  %3170 = vmatprep.mubr.msk.bf16.mxu0 %vm3758_vm1, %v3757_v15 }
 0x38d   :  { %3174 = vmatprep.subr.bf16.mxu1 %v3757_v15  ;;  %3180 = vmatprep.subr.bf16.mxu0 %v3757_v15  ;;  %v820_v24 = vpop.permute.xlu1 %819 }
 0x38e   :  { %v826_v25 = vsel %vm824_vm7, %v820_v24, 0 }
 0x392   :  { %3165 = vmatmul.mubr.msk.bf16.vlgmr.msra.gmra.mrb[12].mxu1 %vm305_vm6, %v3969_v4  ;;  %3171 = vmatmul.mubr.msk.bf16.vlgmr.msra.gmra.mrb[8].mxu0 %vm305_vm6, %v3967_v3 }
 0x393   :  { %3175 = vmatpush3.bf16.xpose.msra.mxu1 %v604_v22  ;;  %3181 = vmatpush3.bf16.xpose.msra.mxu0 %v653_v23 }
 0x394   :  { %3176 = vmatprep.mubr.msk.bf16.mxu1 %vm3758_vm1, %v3757_v15  ;;  %3182 = vmatprep.mubr.msk.bf16.mxu0 %vm3758_vm1, %v3757_v15 }
 0x395   :  { %3186 = vmatprep.subr.bf16.mxu1 %v3757_v15  ;;  %3192 = vmatprep.subr.bf16.mxu0 %v3757_v15 }
 0x39a   :  { %3177 = vmatmul.mubr.msk.bf16.vlgmr.msra.gmra.mrb[16].mxu1 %vm305_vm6, %v3979_v10  ;;  %3183 = vmatmul.mubr.msk.bf16.vlgmr.msra.gmra.mrb[12].mxu0 %vm305_vm6, %v3977_v9 }
 0x39b   :  { %3187 = vmatpush3.bf16.msra.mxu1 %v826_v25  ;;  %3194 = vmatprep.mubr.msk.bf16.mxu0 %vm3758_vm1, %v3757_v15 }
 0x39c   :  { %3188 = vmatprep.mubr.msk.bf16.mxu1 %vm3758_vm1, %v3757_v15  ;;  %3198 = vmatprep.subr.bf16.mxu1 %v3757_v15 }
 0x3eb   :  { %v395_v36 = vpop.f32.mrb[0].mxu0 }
 0x3ec   :  { %v696_v37 = vmul.f32 0.35355338, %v395_v36  ;;  %v3148_v38 = vpop.f32.mrb[1].mxu0 }
 0x3ed   :  { %v398_v39 = vpop.f32.mrb[2].mxu0 }
 0x3ee   :  { %v3149_v40 = vpop.f32.mrb[3].mxu0  ;;  %v346_v41 = vpop.f32.mrb[4].mxu1  ;;  %v4045_v42 = vsel %vm714_vm10, -1e+09, %v696_v37 }
 0x3ef   :  { %v695_v43 = vmul.f32 0.35355338, %v346_v41  ;;  %v726_v44 = vsel %vm305_vm6, %v4045_v42, -inf  ;;  %v3142_v45 = vpop.f32.mrb[5].mxu1 }
 0x3f0   :  { %727 = vmax.xlane.f32.xlu0 %v726_v44  ;;  %v349_v46 = vpop.f32.mrb[6].mxu1 }
 0x3f1   :  { %v3143_v47 = vpop.f32.mrb[7].mxu1  ;;  %v715_v48 = vsel %vm713_vm11, -1e+09, %v695_v43 }
 0x3f2   :  { %v723_v49 = vsel %vm305_vm6, %v715_v48, -inf }
 0x3f3   :  { %724 = vmax.xlane.f32.xlu1 %v723_v49 }
 0x45d   :  { %v444_v50 = vpop.f32.mrb[8].mxu1  ;;  %v493_v51 = vpop.f32.mrb[4].mxu0 }
 0x45e   :  { %v697_v53 = vmul.f32 0.35355338, %v444_v50  ;;  %v698_v54 = vmul.f32 0.35355338, %v493_v51  ;;  %v3154_v55 = vpop.f32.mrb[9].mxu1  ;;  %v3160_v56 = vpop.f32.mrb[5].mxu0 }
 0x45f   :  { %v447_v57 = vpop.f32.mrb[10].mxu1  ;;  %v496_v58 = vpop.f32.mrb[6].mxu0 }
 0x460   :  { %v3155_v59 = vpop.f32.mrb[11].mxu1  ;;  %v3161_v62 = vpop.f32.mrb[7].mxu0  ;;  %v717_v63 = vsel %vm713_vm11, -1e+09, %v697_v53  ;;  %v718_v5 = vsel %vm714_vm10, -1e+09, %v698_v54 }
 0x461   :  { %v729_v2 = vsel %vm305_vm6, %v717_v63, -inf  ;;  %v732_v8 = vsel %vm305_vm6, %v718_v5, -inf }
 0x462   :  { %730 = vmax.xlane.f32.xlu0 %v729_v2 }
 0x465   :  { %v542_v6 = vpop.f32.mrb[12].mxu1  ;;  %v591_v7 = vpop.f32.mrb[8].mxu0 }
 0x466   :  { %v699_v11 = vmul.f32 0.35355338, %v542_v6  ;;  %v700_v12 = vmul.f32 0.35355338, %v591_v7  ;;  %v3172_v13 = vpop.f32.mrb[9].mxu0  ;;  %733 = vmax.xlane.f32.xlu0 %v732_v8  ;;  %v3166_v14 = vpop.f32.mrb[13].mxu1 }
 0x467   :  { %v545_v16 = vpop.f32.mrb[14].mxu1  ;;  %v594_v17 = vpop.f32.mrb[10].mxu0 }
 0x468   :  { %v3167_v18 = vpop.f32.mrb[15].mxu1  ;;  %v3173_v19 = vpop.f32.mrb[11].mxu0  ;;  %v4061_v20 = vsel %vm714_vm10, -1e+09, %v700_v12  ;;  %v719_v21 = vsel %vm713_vm11, -1e+09, %v699_v11 }
 0x469   :  { %v738_v22 = vsel %vm305_vm6, %v4061_v20, -inf  ;;  %v735_v23 = vsel %vm305_vm6, %v719_v21, -inf }
 0x46a   :  { %739 = vmax.xlane.f32.xlu0 %v738_v22  ;;  %736 = vmax.xlane.f32.xlu1 %v735_v23 }
 0x46d   :  { %v640_v24 = vpop.f32.mrb[16].mxu1  ;;  %v689_v25 = vpop.f32.mrb[12].mxu0 }
 0x46e   :  { %v701_v26 = vmul.f32 0.35355338, %v640_v24  ;;  %v702_v27 = vmul.f32 0.35355338, %v689_v25  ;;  %v3178_v28 = vpop.f32.mrb[17].mxu1  ;;  %v3184_v29 = vpop.f32.mrb[13].mxu0 }
 0x46f   :  { %v643_v30 = vpop.f32.mrb[18].mxu1  ;;  %v692_v31 = vpop.f32.mrb[14].mxu0 }
 0x470   :  { %v3179_v32 = vpop.f32.mrb[19].mxu1  ;;  %v3185_v34 = vpop.f32.mrb[15].mxu0  ;;  %v4070_v36 = vsel %vm714_vm10, -1e+09, %v702_v27  ;;  %v721_v37 = vsel %vm713_vm11, -1e+09, %v701_v26 }
 0x471   :  { %v744_v38 = vsel %vm305_vm6, %v4070_v36, -inf  ;;  %v741_v39 = vsel %vm305_vm6, %v721_v37, -inf }
 0x472   :  { %745 = vmax.xlane.f32.xlu0 %v744_v38  ;;  %742 = vmax.xlane.f32.xlu1 %v741_v39 }
 0x47d   :  { %v728_v40 = vpop.xlane.xlu0 %727 }
 0x47e   :  { %v748_v41 = vsub.f32 %v4045_v42, %v728_v40 }
 0x480   :  { %v725_v43 = vpop.xlane.xlu1 %724  ;;  %v757_v44 = vmul.f32 1.442695, %v748_v41 }
 0x481   :  { %v747_v45 = vsub.f32 %v715_v48, %v725_v43 }
 0x482   :  { %3489 = vpow2.f32 %v757_v44 }
 0x483   :  { %916 = vrot.lane.b32.xlu1 %v3960_v61, %s3763_s28  ;;  %v755_v46 = vmul.f32 1.442695, %v747_v45 }
 0x485   :  { %3491 = vpow2.f32 %v755_v46 }
 0x487   :  { %964 = vrot.lane.b32.xlu1 %v3958_v60, %s3763_s28 }
 0x488   :  { %868 = vrot.lane.b32.xlu0 %v3952_v52, %s3763_s28 }
 0x48c   :  { %v3490_v47 = vpop.eup %3489 }
 0x48d   :  { %v774_v49 = vsel %vm305_vm6, %v3490_v47, 0.0 }
 0x48f   :  { %v4085_v50 = vpop.eup %3491 }
 0x490   :  { %v771_v60 = vsel %vm305_vm6, %v4085_v50, 0.0 }
 0x4a7   :  { %775 = vadd.xlane.f32.xlu0 %v774_v49 }
 0x4ab   :  { %772 = vadd.xlane.f32.xlu1 %v771_v60 }
 0x4bc   :  { %1012 = vrot.lane.b32.xlu1 %v3969_v4, %s3763_s28 }
 0x4ef   :  { %v731_v52 = vpop.xlane.xlu0 %730 }
 0x4f0   :  { %v749_v61 = vsub.f32 %v717_v63, %v731_v52 }
 0x4f2   :  { %v759_v42 = vmul.f32 1.442695, %v749_v61 }
 0x4f3   :  { %v734_v48 = vpop.xlane.xlu0 %733 }
 0x4f4   :  { %3493 = vpow2.f32 %v759_v42  ;;  %v750_v51 = vsub.f32 %v718_v5, %v734_v48 }
 0x4f6   :  { %v761_v53 = vmul.f32 1.442695, %v750_v51 }
 0x4f7   :  { %v737_v54 = vpop.xlane.xlu1 %736  ;;  %v740_v57 = vpop.xlane.xlu0 %739 }
 0x4f8   :  { %3495 = vpow2.f32 %v761_v53  ;;  %v751_v55 = vsub.f32 %v719_v21, %v737_v54  ;;  %v752_v16 = vsub.f32 %v4061_v20, %v740_v57  ;;  %v134_v53 = vld [vmem:[%s4595_s6] sm:$0xf] }
 0x4fa   :  { %v763_v56 = vmul.f32 1.442695, %v751_v55  ;;  %v765_v17 = vmul.f32 1.442695, %v752_v16 }
 0x4fc   :  { %3497 = vpow2.f32 %v763_v56  ;;  %v4159_v56 = vsel %vm824_vm7, %v134_v53, 0 }
 0x4fe   :  { %v4091_v58 = vpop.eup %3493 }
 0x4ff   :  { %v746_v59 = vpop.xlane.xlu0 %745  ;;  %v743_v62 = vpop.xlane.xlu1 %742  ;;  %v777_v4 = vsel %vm305_vm6, %v4091_v58, 0.0 }
 0x500   :  { %v753_v2 = vsub.f32 %v721_v37, %v743_v62  ;;  %778 = vadd.xlane.f32.xlu1 %v777_v4  ;;  %v754_v18 = vsub.f32 %v4070_v36, %v746_v59 }
 0x502   :  { %v4095_v63 = vpop.eup %3495  ;;  %v767_v6 = vmul.f32 1.442695, %v753_v2  ;;  %v769_v19 = vmul.f32 1.442695, %v754_v18 }
 0x503   :  { %v869_v5 = vpop.permute.xlu0 %868  ;;  %v780_v7 = vsel %vm305_vm6, %v4095_v63, 0.0  ;;  %v917_v21 = vpop.permute.xlu1 %916 }
 0x504   :  { %v874_v8 = vsel %vm824_vm7, %v869_v5, 0  ;;  %781 = vadd.xlane.f32.xlu0 %v780_v7  ;;  %3499 = vpow2.f32 %v767_v6  ;;  %v922_v34 = vsel %vm824_vm7, %v917_v21, 0 }
 0x505   :  { %3193 = vmatpush3.bf16.msra.mxu0 %v874_v8  ;;  %3501 = vpow2.f32 %v765_v17  ;;  %v135_v8 = vld [vmem:[%s4595_s6 + $0x4] sm:$0xf] }
 0x506   :  { %3204 = vmatprep.subr.bf16.mxu0 %v3757_v15  ;;  %v4101_v11 = vpop.eup %3497  ;;  %3503 = vpow2.f32 %v769_v19 }
 0x507   :  { %v783_v12 = vsel %vm305_vm6, %v4101_v11, 0.0  ;;  %v965_v22 = vpop.permute.xlu1 %964 }
 0x508   :  { %784 = vadd.xlane.f32.xlu1 %v783_v12  ;;  %v970_v30 = vsel %vm824_vm7, %v965_v22, 0 }
 0x50e   :  { %v4105_v13 = vpop.eup %3499 }
 0x50f   :  { %v789_v14 = vsel %vm305_vm6, %v4105_v13, 0.0  ;;  %v4115_v24 = vpop.eup %3501 }
 0x510   :  { %790 = vadd.xlane.f32.xlu1 %v789_v14  ;;  %v4119_v26 = vpop.eup %3503 }
 0x51a   :  { %1060 = vrot.lane.b32.xlu0 %v3967_v3, %s3763_s28  ;;  %v786_v3 = vsel %vm305_vm6, %v4115_v24, 0.0 }
 0x521   :  { %1108 = vrot.lane.b32.xlu1 %v3979_v10, %s3763_s28  ;;  %v792_v10 = vsel %vm305_vm6, %v4119_v26, 0.0 }
 0x534   :  { %v776_v23 = vpop.xlane.xlu0 %775 }
 0x535   :  { %3505 = vrcp.f32 %v776_v23  ;;  %v136_v23 = vld [vmem:[%s4595_s6 + $0x8] sm:$0xf] }
 0x538   :  { %v773_v25 = vpop.xlane.xlu1 %772 }
 0x539   :  { %3507 = vrcp.f32 %v773_v25  ;;  %787 = vadd.xlane.f32.xlu0 %v786_v3 }
 0x53c   :  { %v1013_v36 = vpop.permute.xlu1 %1012 }
 0x53d   :  { %793 = vadd.xlane.f32.xlu0 %v792_v10  ;;  %v1018_v45 = vsel %vm824_vm7, %v1013_v36, 0  ;;  %v137_v10 = vld [vmem:[%s4595_s6 + $0xc] sm:$0xf] }
 0x53f   :  { %v3506_v20 = vpop.eup %3505 }
 0x540   :  { %v804_v27 = vmul.f32 %v3506_v20, %v3490_v47 }
 0x542   :  { %v812_v28 = vpack.c.bf16 %v804_v27, %v804_v27 }
 0x543   :  { %v3508_v29 = vpop.eup %3507 }
 0x544   :  { %v803_v31 = vmul.f32 %v3508_v29, %v4085_v50  ;;  %3195 = vmatmul.mubr.msk.bf16.vlgmr.msra.gmra.mrb[16].mxu0 %vm305_vm6, %v812_v28 }
 0x545   :  { %3205 = vmatpush3.bf16.msra.mxu0 %v970_v30  ;;  %3206 = vmatprep.mubr.msk.bf16.mxu0 %vm3758_vm1, %v3757_v15  ;;  %v4199_v30 = vsel %vm824_vm7, %v137_v10, 0 }
 0x546   :  { %v811_v32 = vpack.c.bf16 %v803_v31, %v803_v31  ;;  %3216 = vmatprep.subr.bf16.mxu0 %v3757_v15 }
 0x548   :  { %3189 = vmatmul.mubr.msk.bf16.vlgmr.msra.gmra.mrb[20].mxu1 %vm305_vm6, %v811_v32 }
 0x549   :  { %3199 = vmatpush3.bf16.msra.mxu1 %v922_v34  ;;  %3200 = vmatprep.mubr.msk.bf16.mxu1 %vm3758_vm1, %v3757_v15 }
 0x54a   :  { %3210 = vmatprep.subr.bf16.mxu1 %v3757_v15 }
 0x553   :  { %1156 = vrot.lane.b32.xlu0 %v3977_v9, %s3763_s28 }
 0x58d   :  { %v779_v37 = vpop.xlane.xlu1 %778 }
 0x58e   :  { %3509 = vrcp.f32 %v779_v37 }
 0x591   :  { %v782_v38 = vpop.xlane.xlu0 %781 }
 0x592   :  { %3511 = vrcp.f32 %v782_v38 }
 0x595   :  { %v785_v39 = vpop.xlane.xlu1 %784  ;;  %v1061_v47 = vpop.permute.xlu0 %1060 }
 0x596   :  { %3513 = vrcp.f32 %v785_v39  ;;  %v1066_v60 = vsel %vm824_vm7, %v1061_v47, 0 }
 0x598   :  { %v3510_v40 = vpop.eup %3509 }
 0x599   :  { %v805_v41 = vmul.f32 %v3510_v40, %v4091_v58 }
 0x59b   :  { %v813_v43 = vpack.c.bf16 %v805_v41, %v805_v41 }
 0x59c   :  { %v3512_v44 = vpop.eup %3511 }
 0x59d   :  { %v806_v46 = vmul.f32 %v3512_v44, %v4095_v63  ;;  %3201 = vmatmul.mubr.msk.bf16.vlgmr.msra.gmra.mrb[24].mxu1 %vm305_vm6, %v813_v43  ;;  %v791_v9 = vpop.xlane.xlu1 %790 }
 0x59e   :  { %3211 = vmatpush3.bf16.msra.mxu1 %v1018_v45  ;;  %3212 = vmatprep.mubr.msk.bf16.mxu1 %vm3758_vm1, %v3757_v15  ;;  %3515 = vrcp.f32 %v791_v9 }
 0x59f   :  { %v814_v49 = vpack.c.bf16 %v806_v46, %v806_v46  ;;  %3222 = vmatprep.subr.bf16.mxu1 %v3757_v15 }
 0x5a0   :  { %v3514_v50 = vpop.eup %3513 }
 0x5a1   :  { %3207 = vmatmul.mubr.msk.bf16.vlgmr.msra.gmra.mrb[20].mxu0 %vm305_vm6, %v814_v49  ;;  %v807_v52 = vmul.f32 %v3514_v50, %v4101_v11  ;;  %v1109_v61 = vpop.permute.xlu1 %1108  ;;  %v4180_v11 = vsel %vm824_vm7, %v135_v8, 0 }
 0x5a2   :  { %3217 = vmatpush3.bf16.msra.mxu0 %v1066_v60  ;;  %3218 = vmatprep.mubr.msk.bf16.mxu0 %vm3758_vm1, %v3757_v15  ;;  %v1114_v48 = vsel %vm824_vm7, %v1109_v61, 0 }
 0x5a3   :  { %3228 = vmatprep.subr.bf16.mxu0 %v3757_v15  ;;  %v815_v42 = vpack.c.bf16 %v807_v52, %v807_v52 }
 0x5a5   :  { %3213 = vmatmul.mubr.msk.bf16.vlgmr.msra.gmra.mrb[28].mxu1 %vm305_vm6, %v815_v42 }
 0x5a6   :  { %3223 = vmatpush3.bf16.msra.mxu1 %v1114_v48  ;;  %3224 = vmatprep.mubr.msk.bf16.mxu1 %vm3758_vm1, %v3757_v15 }
 0x5a7   :  { %3234 = vmatprep.subr.bf16.mxu1 %v3757_v15 }
 0x5a8   :  { %v3516_v51 = vpop.eup %3515 }
 0x5a9   :  { %v809_v54 = vmul.f32 %v3516_v51, %v4105_v13 }
 0x5ab   :  { %v817_v55 = vpack.c.bf16 %v809_v54, %v809_v54  ;;  %v2989_v54 = vld [vmem:[#allocation8] ss:$0 sm:$0xff] }
 0x5ad   :  { %3225 = vmatmul.mubr.msk.bf16.vlgmr.msra.gmra.mrb[32].mxu1 %vm305_vm6, %v817_v55 }
 0x5ae   :  { %3235 = vmatpush3.bf16.msra.mxu1 %v4159_v56  ;;  %3236 = vmatprep.mubr.msk.bf16.mxu1 %vm3758_vm1, %v3757_v15 }
 0x5af   :  { %3246 = vmatprep.subr.bf16.mxu1 %v3757_v15 }
 0x5c6   :  { %v788_v57 = vpop.xlane.xlu0 %787 }
 0x5c7   :  { %3517 = vrcp.f32 %v788_v57 }
 0x5ca   :  { %v794_v58 = vpop.xlane.xlu0 %793 }
 0x5cb   :  { %3519 = vrcp.f32 %v794_v58 }
 0x5ce   :  { %v1157_v4 = vpop.permute.xlu0 %1156 }
 0x5cf   :  { %v1162_v6 = vsel %vm824_vm7, %v1157_v4, 0 }
 0x5d1   :  { %v3518_v59 = vpop.eup %3517 }
 0x5d2   :  { %v808_v62 = vmul.f32 %v3518_v59, %v4115_v24  ;;  %v4191_v24 = vsel %vm824_vm7, %v136_v23, 0 }
 0x5d4   :  { %v816_v2 = vpack.c.bf16 %v808_v62, %v808_v62 }
 0x5d5   :  { %v3520_v63 = vpop.eup %3519 }
 0x5d6   :  { %3219 = vmatmul.mubr.msk.bf16.vlgmr.msra.gmra.mrb[24].mxu0 %vm305_vm6, %v816_v2  ;;  %v810_v5 = vmul.f32 %v3520_v63, %v4119_v26 }
 0x5d7   :  { %3229 = vmatpush3.bf16.msra.mxu0 %v1162_v6  ;;  %3230 = vmatprep.mubr.msk.bf16.mxu0 %vm3758_vm1, %v3757_v15 }
 0x5d8   :  { %3240 = vmatprep.subr.bf16.mxu0 %v3757_v15  ;;  %v818_v7 = vpack.c.bf16 %v810_v5, %v810_v5 }
 0x5de   :  { %3231 = vmatmul.mubr.msk.bf16.vlgmr.msra.gmra.mrb[28].mxu0 %vm305_vm6, %v818_v7 }
 0x5df   :  { %3242 = vmatprep.mubr.msk.bf16.mxu0 %vm3758_vm1, %v3757_v15  ;;  %3241 = vmatpush3.bf16.msra.mxu0 %v4180_v11 }
 0x5e0   :  { %3252 = vmatprep.subr.bf16.mxu0 %v3757_v15 }
 0x617   :  { %v910_v12 = vpop.f32.mrb[16].mxu0 }
 0x618   :  { %v3196_v13 = vpop.f32.mrb[17].mxu0 }
 0x619   :  { %v913_v14 = vpop.f32.mrb[18].mxu0 }
 0x61a   :  { %v3197_v16 = vpop.f32.mrb[19].mxu0 }
 0x61b   :  { %v862_v17 = vpop.f32.mrb[20].mxu1 }
 0x61c   :  { %v1204_v18 = vpack.c.bf16 %v910_v12, %v862_v17  ;;  %v3190_v19 = vpop.f32.mrb[21].mxu1 }
 0x61d   :  { %v865_v21 = vpop.f32.mrb[22].mxu1 }
 0x61e   :  { %v3191_v22 = vpop.f32.mrb[23].mxu1  ;;  %3237 = vmatmul.mubr.msk.bf16.vlgmr.msra.gmra.mrb[36].mxu1 %vm305_vm6, %v1204_v18 }
 0x61f   :  { %3248 = vmatprep.mubr.msk.bf16.mxu1 %vm3758_vm1, %v3757_v15  ;;  %3247 = vmatpush3.bf16.msra.mxu1 %v4191_v24 }
 0x620   :  { %3258 = vmatprep.subr.bf16.mxu1 %v3757_v15 }
 0x670   :  { %v958_v25 = vpop.f32.mrb[24].mxu1 }
 0x671   :  { %v3202_v3 = vpop.f32.mrb[25].mxu1 }
 0x672   :  { %v961_v26 = vpop.f32.mrb[26].mxu1 }
 0x673   :  { %v3203_v20 = vpop.f32.mrb[27].mxu1 }
 0x674   :  { %v1006_v27 = vpop.f32.mrb[20].mxu0 }
 0x675   :  { %v1260_v28 = vpack.c.bf16 %v1006_v27, %v958_v25  ;;  %v3208_v29 = vpop.f32.mrb[21].mxu0 }
 0x676   :  { %v1009_v31 = vpop.f32.mrb[22].mxu0 }
 0x677   :  { %v3209_v32 = vpop.f32.mrb[23].mxu0  ;;  %3243 = vmatmul.mubr.msk.bf16.vlgmr.msra.gmra.mrb[32].mxu0 %vm305_vm6, %v1260_v28 }
 0x678   :  { %3253 = vmatpush3.bf16.msra.mxu0 %v4199_v30  ;;  %3254 = vmatprep.mubr.msk.bf16.mxu0 %vm3758_vm1, %v3757_v15  ;;  %v1054_v34 = vpop.f32.mrb[28].mxu1 }
 0x679   :  { %3266 = vmatprep.subr.bf16.mxu0 %v3757_v15  ;;  %v3214_v36 = vpop.f32.mrb[29].mxu1 }
 0x67a   :  { %v1057_v37 = vpop.f32.mrb[30].mxu1  ;;  %v4235_v36 = vld [vmem:[%s4599_s10 + $0x8] sm:$0xff]  }
 0x67b   :  { %v3215_v38 = vpop.f32.mrb[31].mxu1  ;;  %v4243_v37 = vld [vmem:[%s4601_s12] sm:$0xff]  }
 0x67c   :  { %v4249_v38 = vld [vmem:[%s4601_s12 + $0x8] sm:$0xff]  }
 0x680   :  { %v1150_v39 = vpop.f32.mrb[32].mxu1 }
 0x681   :  { %v3226_v40 = vpop.f32.mrb[33].mxu1 }
 0x682   :  { %v1153_v41 = vpop.f32.mrb[34].mxu1 }
 0x683   :  { %v3227_v43 = vpop.f32.mrb[35].mxu1 }
 0x6a9   :  { %v1102_v44 = vpop.f32.mrb[24].mxu0 }
 0x6aa   :  { %v1310_v45 = vpack.c.bf16 %v1102_v44, %v1054_v34  ;;  %v3220_v46 = vpop.f32.mrb[25].mxu0  ;;  %v4229_v34 = vld [vmem:[%s4599_s10] sm:$0xff]  }
 0x6ab   :  { %v1105_v47 = vpop.f32.mrb[26].mxu0 }
 0x6ac   :  { %v3221_v9 = vpop.f32.mrb[27].mxu0  ;;  %3249 = vmatmul.mubr.msk.bf16.vlgmr.msra.gmra.mrb[40].mxu1 %vm305_vm6, %v1310_v45 }
 0x6ad   :  { %3262 = vmatprep.mubr.msk.bf16.mxu1 %vm3758_vm1, %v3757_v15  ;;  %3259 = vmatpush3.bf16.msra.mxu1 %v4229_v34 }
 0x6ae   :  { %3260 = vmatprep.subr.bf16.mxu1 %v3757_v15 }
 0x6b1   :  { %v1198_v49 = vpop.f32.mrb[28].mxu0  ;;  %3261 = vmatpush3.bf16.msra.mxu1 %v4235_v36 }
 0x6b2   :  { %v1360_v50 = vpack.c.bf16 %v1198_v49, %v1150_v39  ;;  %v3232_v60 = vpop.f32.mrb[29].mxu0  ;;  %3278 = vmatprep.subr.bf16.mxu1 %v3757_v15 }
 0x6b3   :  { %v1201_v52 = vpop.f32.mrb[30].mxu0 }
 0x6b4   :  { %v3233_v61 = vpop.f32.mrb[31].mxu0  ;;  %3255 = vmatmul.mubr.msk.bf16.vlgmr.msra.gmra.mrb[36].mxu0 %vm305_vm6, %v1360_v50 }
 0x6b5   :  { %3274 = vmatprep.mubr.msk.bf16.mxu0 %vm3758_vm1, %v3757_v15  ;;  %3267 = vmatpush3.bf16.msra.mxu0 %v4243_v37 }
 0x6b6   :  { %3268 = vmatprep.subr.bf16.mxu0 %v3757_v15 }
 0x6b9   :  { %3269 = vmatpush3.bf16.msra.mxu0 %v4249_v38 }
 0x6ba   :  { %3270 = vmatprep.subr.bf16.mxu0 %v3757_v15 }
 0x6f1   :  { %v1245_v42 = vpop.f32.mrb[36].mxu1 }
 0x6f2   :  { %v3238_v48 = vpop.f32.mrb[37].mxu1  ;;  %v1258_v55 = vadd.f32 %v2989_v54, %v1245_v42 }
 0x6f3   :  { %v1248_v51 = vpop.f32.mrb[38].mxu1 }
 0x6f4   :  { %v3239_v53 = vpop.f32.mrb[39].mxu1  ;;  %v1259_v58 = vadd.f32 %v2989_v54, %v1248_v51  ;;  %v2993_v51 = vld [vmem:[#allocation10] ss:$0 sm:$0xff] }
 0x74a   :  { %v1301_v57 = vpop.f32.mrb[32].mxu0 }
 0x74b   :  { %v1308_v59 = vadd.f32 %v1301_v57, %v1258_v55  ;;  %v3244_v62 = vpop.f32.mrb[33].mxu0 }
 0x74c   :  { %v1304_v4 = vpop.f32.mrb[34].mxu0 }
 0x74d   :  { %v1309_v2 = vadd.f32 %v1304_v4, %v1259_v58  ;;  %v3245_v63 = vpop.f32.mrb[35].mxu0 }
 0x77f   :  { %v1351_v6 = vpop.f32.mrb[40].mxu1 }
 0x780   :  { %v1358_v5 = vadd.f32 %v1351_v6, %v1308_v59  ;;  %v3250_v7 = vpop.f32.mrb[41].mxu1  ;;  %v2994_v59 = vld [vmem:[#allocation11] ss:$0 sm:$0xff]  ;;  %v3577_v6 = vld [vmem:[%s4593_s4] sm:$0xff]  }
 0x781   :  { %v1354_v8 = vpop.f32.mrb[42].mxu1  ;;  %v4268_v7 = vld [vmem:[%s4601_s12 + $0x10] sm:$0xff]  }
 0x782   :  { %v1359_v12 = vadd.f32 %v1354_v8, %v1309_v2  ;;  %v3251_v13 = vpop.f32.mrb[43].mxu1  ;;  %3271 = vmatpush3.bf16.msra.mxu0 %v4268_v7  ;;  %v4275_v8 = vld [vmem:[%s4601_s12 + $0x18] sm:$0xff]  }
 0x783   :  { %3272 = vmatprep.subr.bf16.mxu0 %v3757_v15 }
 0x786   :  { %3273 = vmatpush3.bf16.msra.mxu0 %v4275_v8 }
 0x787   :  { %v1401_v14 = vpop.f32.mrb[36].mxu0  ;;  %3292 = vmatprep.subr.bf16.mxu0 %v3757_v15 }
 0x788   :  { %v1408_v16 = vadd.f32 %v1401_v14, %v1358_v5  ;;  %v3256_v17 = vpop.f32.mrb[37].mxu0  ;;  %v3578_v5 = vld [vmem:[%s4593_s4 + $0x8] sm:$0xff]  }
 0x789   :  { %v1404_v18 = vpop.f32.mrb[38].mxu0 }
 0x78a   :  { %v4213_v19 = vadd.f32 %v1408_v16, %v3918_v0  ;;  %v1409_v21 = vadd.f32 %v1404_v18, %v1359_v12  ;;  %v3257_v22 = vpop.f32.mrb[39].mxu0  ;;  %v2995_v12 = vld [vmem:[%s4600_s11] ss:$0 sm:$0xff] }
 0x78c   :  { %v4216_v23 = vadd.f32 %v1409_v21, %v3923_v1  ;;  %v1412_v25 = vsel %vm153_vm0, %v4213_v19, 0.0 }
 0x78d   :  { %1413 = vadd.xlane.f32.xlu1 %v1412_v25 }
 0x78e   :  { %v1415_v3 = vsel %vm153_vm0, %v4216_v23, 0.0 }
 0x78f   :  { %1416 = vadd.xlane.f32.xlu0 %v1415_v3 }
 0x81a   :  { %v1414_v26 = vpop.xlane.xlu1 %1413 }
 0x81b   :  { %v1418_v10 = vmul.f32 0.03125, %v1414_v26  ;;  %v4288_v26 = vld [vmem:[%s4602_s13] ss:$0 sm:$0xff] }
 0x81c   :  { %v1417_v20 = vpop.xlane.xlu0 %1416 }
 0x81d   :  { %v1420_v27 = vsub.f32 %v4213_v19, %v1418_v10  ;;  %v1419_v0 = vmul.f32 0.03125, %v1417_v20 }
 0x81f   :  { %v1421_v28 = vsub.f32 %v4216_v23, %v1419_v0  ;;  %v1422_v29 = vmul.f32 %v1420_v27, %v1420_v27  ;;  %v1456_v54 = vmul.f32 %v2993_v51, %v1420_v27 }
 0x821   :  { %v1424_v1 = vsel %vm153_vm0, %v1422_v29, 0.0  ;;  %v1423_v31 = vmul.f32 %v1421_v28, %v1421_v28  ;;  %v1457_v55 = vmul.f32 %v2993_v51, %v1421_v28 }
 0x822   :  { %1425 = vadd.xlane.f32.xlu0 %v1424_v1 }
 0x823   :  { %v1427_v32 = vsel %vm153_vm0, %v1423_v31, 0.0 }
 0x826   :  { %1428 = vadd.xlane.f32.xlu0 %v1427_v32 }
 0x8af   :  { %v1426_v39 = vpop.xlane.xlu0 %1425 }
 0x8b0   :  { %v1430_v40 = vmul.f32 0.032258064, %v1426_v39 }
 0x8b2   :  { %3521 = vrsqrt.f32 %v1430_v40  ;;  %vm1434_vm12 = vcmp.eq.f32.partialorder %v1430_v40, inf  ;;  %v1437_v46 = vand.u32 2147483648, %v1430_v40  ;;  %vm1436_vm13 = vcmp.eq.f32.partialorder %v1430_v40, 0.0 }
 0x8b3   :  { %v1429_v41 = vpop.xlane.xlu0 %1428 }
 0x8b4   :  { %v1431_v43 = vmul.f32 0.032258064, %v1429_v41 }
 0x8b6   :  { %3523 = vrsqrt.f32 %v1431_v43  ;;  %vm1441_vm14 = vcmp.eq.f32.partialorder %v1431_v43, inf  ;;  %v1444_v52 = vand.u32 2147483648, %v1431_v43  ;;  %vm1443_vm15 = vcmp.eq.f32.partialorder %v1431_v43, 0.0 }
 0x8bc   :  { %v3522_v44 = vpop.eup %3521 }
 0x8bd   :  { %v1433_v45 = vmul.f32 %v3522_v44, %v1430_v40 }
 0x8bf   :  { %v1435_v47 = vsel %vm1434_vm12, %v1430_v40, %v1433_v45 }
 0x8c0   :  { %v3524_v9 = vpop.eup %3523  ;;  %v1438_v49 = vsel %vm1436_vm13, %v1437_v46, %v1435_v47 }
 0x8c1   :  { %v1446_v50 = vadd.f32 1e-06, %v1438_v49  ;;  %v1440_v60 = vmul.f32 %v3524_v9, %v1431_v43 }
 0x8c3   :  { %3525 = vrcp.f32 %v1446_v50  ;;  %v1442_v61 = vsel %vm1441_vm14, %v1431_v43, %v1440_v60 }
 0x8c4   :  { %v1445_v42 = vsel %vm1443_vm15, %v1444_v52, %v1442_v61 }
 0x8c5   :  { %v1447_v48 = vadd.f32 1e-06, %v1445_v42 }
 0x8c7   :  { %3527 = vrcp.f32 %v1447_v48 }
 0x8cd   :  { %v3526_v53 = vpop.eup %3525 }
 0x8ce   :  { %v1458_v57 = vmul.f32 %v3526_v53, %v1456_v54 }
 0x8d0   :  { %v1466_v4 = vadd.f32 %v2994_v59, %v1458_v57 }
 0x8d1   :  { %v3528_v58 = vpop.eup %3527 }
 0x8d2   :  { %v1459_v62 = vmul.f32 %v3528_v58, %v1457_v55 }
 0x8d4   :  { %v1467_v2 = vadd.f32 %v2994_v59, %v1459_v62 }
 0x8d6   :  { %v1468_v63 = vpack.c.bf16 %v1467_v2, %v1466_v4 }
 0x8d8   :  { %3263 = vmatmul.mubr.msk.bf16.vlgmr.msra.gmra.mrb[44].mxu1 %vm153_vm0, %v1468_v63  ;;  %v3579_v63 = vld [vmem:[#allocation2] ss:$0 sm:$0xff] }
 0x8d9   :  { %3279 = vmatpush3.bf16.msra.mxu1 %v3577_v6  ;;  %3282 = vmatprep.mubr.msk.bf16.mxu1 %vm3758_vm1, %v3757_v15 }
 0x8da   :  { %3280 = vmatprep.subr.bf16.mxu1 %v3757_v15 }
 0x8dd   :  { %3281 = vmatpush3.bf16.msra.mxu1 %v3578_v5 }
 0x8de   :  { %3286 = vmatprep.subr.bf16.mxu1 %v3757_v15 }
 0x9ab   :  { %v1524_v13 = vpop.f32.mrb[44].mxu1 }
 0x9ac   :  { %v1525_v14 = vadd.f32 %v2995_v12, %v1524_v13  ;;  %v3264_v16 = vpop.f32.mrb[45].mxu1 }
 0x9ad   :  { %v1527_v17 = vpop.f32.mrb[46].mxu1  ;;  %v3580_v16 = vld [vmem:[#allocation5] ss:$0 sm:$0xff] }
 0x9ae   :  { %v1528_v18 = vadd.f32 %v2995_v12, %v1527_v17  ;;  %v3265_v21 = vpop.f32.mrb[47].mxu1  ;;  %v1531_v22 = vmax.f32 %v1525_v14, 0.0 }
 0x9b0   :  { %v1532_v25 = vmax.f32 %v1528_v18, 0.0 }
 0x9b2   :  { %v1533_v3 = vpack.c.bf16 %v1532_v25, %v1531_v22 }
 0x9b4   :  { %3275 = vmatmul.mubr.msk.bf16.vlgmr.msra.gmra.mrb[40].mxu0 %vm1564_vm2, %v1533_v3 }
 0x9b5   :  { %3294 = vmatprep.mubr.msk.bf16.mxu0 %vm3758_vm1, %v3757_v15 }
 0xa87   :  { %v1602_v10 = vpop.f32.mrb[40].mxu0 }
 0xa88   :  { %v1603_v20 = vadd.f32 %v4288_v26, %v1602_v10  ;;  %v3276_v27 = vpop.f32.mrb[41].mxu0  ;;  %v3581_v10 = vld [vmem:[#allocation7] ss:$0 sm:$0xff] }
 0xa89   :  { %v1605_v0 = vpop.f32.mrb[42].mxu0 }
 0xa8a   :  { %v4292_v28 = vadd.f32 %v1603_v20, %v4213_v19  ;;  %v1606_v29 = vadd.f32 %v4288_v26, %v1605_v0  ;;  %v3277_v1 = vpop.f32.mrb[43].mxu0 }
 0xa8c   :  { %v4296_v31 = vadd.f32 %v1606_v29, %v4216_v23  ;;  %v1611_v32 = vsel %vm153_vm0, %v4292_v28, 0.0 }
 0xa8d   :  { %1612 = vadd.xlane.f32.xlu1 %v1611_v32 }
 0xa8e   :  { %v1614_v39 = vsel %vm153_vm0, %v4296_v31, 0.0 }
 0xa8f   :  { %1615 = vadd.xlane.f32.xlu0 %v1614_v39 }
 0xb1a   :  { %v1613_v40 = vpop.xlane.xlu1 %1612 }
 0xb1b   :  { %v1617_v41 = vmul.f32 0.03125, %v1613_v40 }
 0xb1c   :  { %v1616_v43 = vpop.xlane.xlu0 %1615 }
 0xb1d   :  { %v1619_v19 = vsub.f32 %v4292_v28, %v1617_v41  ;;  %v1618_v44 = vmul.f32 0.03125, %v1616_v43 }
 0xb1f   :  { %v1620_v45 = vsub.f32 %v4296_v31, %v1618_v44  ;;  %v1621_v46 = vmul.f32 %v1619_v19, %v1619_v19  ;;  %v1649_v6 = vmul.f32 %v3579_v63, %v1619_v19 }
 0xb21   :  { %v1623_v23 = vsel %vm153_vm0, %v1621_v46, 0.0  ;;  %v1622_v47 = vmul.f32 %v1620_v45, %v1620_v45  ;;  %v1650_v5 = vmul.f32 %v3579_v63, %v1620_v45 }
 0xb22   :  { %1624 = vadd.xlane.f32.xlu1 %v1623_v23 }
 0xb23   :  { %v1626_v9 = vsel %vm153_vm0, %v1622_v47, 0.0 }
 0xb24   :  { %1627 = vadd.xlane.f32.xlu0 %v1626_v9 }
 0xbaf   :  { %v1625_v49 = vpop.xlane.xlu1 %1624 }
 0xbb0   :  { %v1629_v50 = vmul.f32 0.032258064, %v1625_v49 }
 0xbb1   :  { %v1628_v60 = vpop.xlane.xlu0 %1627 }
 0xbb2   :  { %3529 = vrsqrt.f32 %v1629_v50  ;;  %v1630_v52 = vmul.f32 0.032258064, %v1628_v60  ;;  %vm1633_vm3 = vcmp.eq.f32.partialorder %v1629_v50, inf  ;;  %v1636_v48 = vand.u32 2147483648, %v1629_v50 }
 0xbb3   :  { %vm1635_vm4 = vcmp.eq.f32.partialorder %v1629_v50, 0.0 }
 0xbb4   :  { %3531 = vrsqrt.f32 %v1630_v52  ;;  %vm1640_vm5 = vcmp.eq.f32.partialorder %v1630_v52, inf  ;;  %v1643_v58 = vand.u32 2147483648, %v1630_v52  ;;  %vm1642_vm8 = vcmp.eq.f32.partialorder %v1630_v52, 0.0 }
 0xbbc   :  { %v3530_v61 = vpop.eup %3529 }
 0xbbd   :  { %v1632_v42 = vmul.f32 %v3530_v61, %v1629_v50 }
 0xbbe   :  { %v3532_v51 = vpop.eup %3531 }
 0xbbf   :  { %v1634_v53 = vsel %vm1633_vm3, %v1629_v50, %v1632_v42  ;;  %v1639_v55 = vmul.f32 %v3532_v51, %v1630_v52 }
 0xbc0   :  { %v1637_v54 = vsel %vm1635_vm4, %v1636_v48, %v1634_v53 }
 0xbc1   :  { %v1645_v57 = vadd.f32 1e-06, %v1637_v54  ;;  %v1641_v59 = vsel %vm1640_vm5, %v1630_v52, %v1639_v55 }
 0xbc2   :  { %v1644_v62 = vsel %vm1642_vm8, %v1643_v58, %v1641_v59 }
 0xbc3   :  { %3533 = vrcp.f32 %v1645_v57  ;;  %v1646_v4 = vadd.f32 1e-06, %v1644_v62 }
 0xbc5   :  { %3535 = vrcp.f32 %v1646_v4 }
 0xbcd   :  { %v3534_v2 = vpop.eup %3533 }
 0xbce   :  { %v1651_v12 = vmul.f32 %v3534_v2, %v1649_v6 }
 0xbcf   :  { %v3536_v13 = vpop.eup %3535 }
 0xbd0   :  { %v1652_v14 = vmul.f32 %v3536_v13, %v1650_v5  ;;  %v1653_v17 = vadd.f32 %v3580_v16, %v1651_v12 }
 0xbd2   :  { %v1654_v18 = vadd.f32 %v3580_v16, %v1652_v14 }
 0xbd4   :  { %v1655_v21 = vpack.c.bf16 %v1654_v18, %v1653_v17 }
 0xbd6   :  { %3283 = vmatmul.mubr.msk.bf16.vlgmr.msra.gmra.mrb[48].mxu1 %vm153_vm0, %v1655_v21 }
 0xbd7   :  { %3288 = vmatprep.mubr.msk.bf16.mxu1 %vm3758_vm1, %v3757_v15 }
 0xca9   :  { %v1693_v22 = vpop.f32.mrb[48].mxu1 }
 0xcaa   :  { %v3284_v25 = vpop.f32.mrb[49].mxu1  ;;  %v1694_v20 = vadd.f32 %v3581_v10, %v1693_v22 }
 0xcab   :  { %v1696_v3 = vpop.f32.mrb[50].mxu1 }
 0xcac   :  { %v1697_v27 = vadd.f32 %v3581_v10, %v1696_v3  ;;  %v3285_v0 = vpop.f32.mrb[51].mxu1  ;;  %v4312_v1 = vpack.c.bf16 %v1694_v20, %v1694_v20 }
 0xcae   :  { %v3463_v29 = vpack.i.bf16 %v1697_v27, %v1694_v20  ;;  %v4316_v32 = vpack.c.bf16 %v1697_v27, %v1697_v27 }
 0xcb0   :  { %3464 = vrot.lane.b32.xlu0 %v3463_v29, %s3759_s5  ;;  %3459 = vrot.lane.b32.xlu1 %v3463_v29, %s3760_s26 }
 0xcb4   :  { %3469 = vrot.lane.b32.xlu1 %v3463_v29, %s3761_s25  ;;  %s3765_s25 = smov [#allocation13]  }
 0xcb8   :  { %1729 = vrot.lane.b32.xlu1 %v4312_v1, %s3762_s27 }
 0xcbc   :  { %1778 = vrot.lane.b32.xlu1 %v4316_v32, %s3762_s27 }
 0xd22   :  { %v3465_v39 = vpop.permute.xlu0 %3464  ;;  %v3460_v40 = vpop.permute.xlu1 %3459 }
 0xd23   :  { %v3462_v41 = vunpack.i.h.bf16 %v3460_v40  ;;  %v3461_v43 = vunpack.i.l.bf16 %v3460_v40  ;;  %v3467_v19 = vunpack.i.h.bf16 %v3465_v39  ;;  %v3466_v44 = vunpack.i.l.bf16 %v3465_v39 }
 0xd25   :  { %v4320_v45 = vpack.c.bf16 %v3462_v41, %v3462_v41  ;;  %v4322_v46 = vpack.c.bf16 %v3461_v43, %v3461_v43  ;;  %v4328_v47 = vpack.c.bf16 %v3467_v19, %v3467_v19  ;;  %v4330_v9 = vpack.c.bf16 %v3466_v44, %v3466_v44 }
 0xd26   :  { %v3470_v23 = vpop.permute.xlu1 %3469 }
 0xd27   :  { %1827 = vrot.lane.b32.xlu0 %v4322_v46, %s3762_s27  ;;  %1876 = vrot.lane.b32.xlu1 %v4320_v45, %s3762_s27  ;;  %v3472_v49 = vunpack.i.h.bf16 %v3470_v23  ;;  %v3471_v50 = vunpack.i.l.bf16 %v3470_v23 }
 0xd29   :  { %v4337_v61 = vpack.c.bf16 %v3472_v49, %v3472_v49  ;;  %v4339_v42 = vpack.c.bf16 %v3471_v50, %v3471_v50 }
 0xd2a   :  { %v1730_v60 = vpop.permute.xlu1 %1729 }
 0xd2b   :  { %v1735_v52 = vsel %vm305_vm6, %v1730_v60, 0  ;;  %1925 = vrot.lane.b32.xlu0 %v4330_v9, %s3762_s27  ;;  %1974 = vrot.lane.b32.xlu1 %v4328_v47, %s3762_s27 }
 0xd2c   :  { %3287 = vmatpush3.bf16.xpose.msra.mxu1 %v1735_v52 }
 0xd2d   :  { %3298 = vmatprep.subr.bf16.mxu1 %v3757_v15 }
 0xd2e   :  { %v1779_v48 = vpop.permute.xlu1 %1778 }
 0xd2f   :  { %v1784_v51 = vsel %vm305_vm6, %v1779_v48, 0  ;;  %2023 = vrot.lane.b32.xlu0 %v4339_v42, %s3762_s27  ;;  %2072 = vrot.lane.b32.xlu1 %v4337_v61, %s3762_s27  ;;  %s2951_s27 = sshll.u32 %s3765_s25, 4  ;;  %s2952_s27 = int_to_ptr.vmem [resolvable:$true] %s2951_s27 }
 0xd30   :  { %3293 = vmatpush3.bf16.xpose.msra.mxu0 %v1784_v51  ;;  %s3719_s8 = scalar_lea.vmem %s2952_s27, 256  ;;  %p3724_p7 = scmp.lt.s32.totalorder %s2952_s27, %s2952_s27 }
 0xd31   :  { %3304 = vmatprep.subr.bf16.mxu0 %v3757_v15  ;;  %p3720_p6 = scmp.ne.s32.totalorder %s2952_s27, %s3719_s8  ;;  %p3725_p8 = scmp.lt.s32.totalorder %s3719_s8, %s3719_s8 }
 0xd33   :  { %3289 = vmatmul.mubr.msk.bf16.vlgmr.msra.gmra.mrb[52].mxu1 %vm305_vm6, %v4312_v1  ;;  %p3726_p9 = por %p3725_p8, %p3724_p7 }
 0xd34   :  { %3300 = vmatprep.mubr.msk.bf16.mxu1 %vm3758_vm1, %v3757_v15 }
 0xd35   :  { %p3727_p10 = pnand %p3726_p9, %p3720_p6 }
 0xd37   :  { %3295 = vmatmul.mubr.msk.bf16.vlgmr.msra.gmra.mrb[44].mxu0 %vm305_vm6, %v4316_v32 }
 0xd38   :  { %3306 = vmatprep.mubr.msk.bf16.mxu0 %vm3758_vm1, %v3757_v15 }
 0xd99   :  { %v1828_v53 = vpop.permute.xlu0 %1827  ;;  %v1877_v54 = vpop.permute.xlu1 %1876 }
 0xd9a   :  { %v1833_v55 = vsel %vm305_vm6, %v1828_v53, 0  ;;  %v1882_v57 = vsel %vm305_vm6, %v1877_v54, 0 }
 0xd9b   :  { %3299 = vmatpush3.bf16.xpose.msra.mxu1 %v1833_v55  ;;  %3305 = vmatpush3.bf16.xpose.msra.mxu0 %v1882_v57 }
 0xd9c   :  { %3310 = vmatprep.subr.bf16.mxu1 %v3757_v15  ;;  %3316 = vmatprep.subr.bf16.mxu0 %v3757_v15 }
 0xd9d   :  { %v1926_v58 = vpop.permute.xlu0 %1925  ;;  %v1975_v59 = vpop.permute.xlu1 %1974 }
 0xd9e   :  { %v1931_v62 = vsel %vm305_vm6, %v1926_v58, 0  ;;  %v1980_v4 = vsel %vm305_vm6, %v1975_v59, 0 }
 0xda1   :  { %v2024_v2 = vpop.permute.xlu0 %2023  ;;  %v2073_v63 = vpop.permute.xlu1 %2072 }
 0xda2   :  { %3301 = vmatmul.mubr.msk.bf16.vlgmr.msra.gmra.mrb[56].mxu1 %vm305_vm6, %v4322_v46  ;;  %3307 = vmatmul.mubr.msk.bf16.vlgmr.msra.gmra.mrb[48].mxu0 %vm305_vm6, %v4320_v45  ;;  %v2029_v6 = vsel %vm305_vm6, %v2024_v2, 0  ;;  %v2078_v5 = vsel %vm305_vm6, %v2073_v63, 0 }
 0xda3   :  { %3311 = vmatpush3.bf16.xpose.msra.mxu1 %v1931_v62  ;;  %3317 = vmatpush3.bf16.xpose.msra.mxu0 %v1980_v4 }
 0xda4   :  { %3312 = vmatprep.mubr.msk.bf16.mxu1 %vm3758_vm1, %v3757_v15  ;;  %3318 = vmatprep.mubr.msk.bf16.mxu0 %vm3758_vm1, %v3757_v15 }
 0xda5   :  { %3322 = vmatprep.subr.bf16.mxu1 %v3757_v15  ;;  %3328 = vmatprep.subr.bf16.mxu0 %v3757_v15 }
 0xdaa   :  { %3313 = vmatmul.mubr.msk.bf16.vlgmr.msra.gmra.mrb[60].mxu1 %vm305_vm6, %v4330_v9  ;;  %3319 = vmatmul.mubr.msk.bf16.vlgmr.msra.gmra.mrb[52].mxu0 %vm305_vm6, %v4328_v47 }
 0xdab   :  { %3323 = vmatpush3.bf16.xpose.msra.mxu1 %v2029_v6  ;;  %3329 = vmatpush3.bf16.xpose.msra.mxu0 %v2078_v5 }
 0xdac   :  { %3324 = vmatprep.mubr.msk.bf16.mxu1 %vm3758_vm1, %v3757_v15  ;;  %3330 = vmatprep.mubr.msk.bf16.mxu0 %vm3758_vm1, %v3757_v15 }
 0xdad   :  { %3340 = vmatprep.subr.bf16.mxu0 %v3757_v15  ;;  %3334 = vmatprep.subr.bf16.mxu1 %v3757_v15 }
 0xdb2   :  { %3325 = vmatmul.mubr.msk.bf16.vlgmr.msra.gmra.mrb[64].mxu1 %vm305_vm6, %v4339_v42  ;;  %3331 = vmatmul.mubr.msk.bf16.vlgmr.msra.gmra.mrb[56].mxu0 %vm305_vm6, %v4337_v61 }
 0xdb3   :  { %3336 = vmatprep.mubr.msk.bf16.mxu1 %vm3758_vm1, %v3757_v15  ;;  %3342 = vmatprep.mubr.msk.bf16.mxu0 %vm3758_vm1, %v3757_v15 }
 0xe06   :  { %v1771_v12 = vpop.f32.mrb[52].mxu1 }
 0xe07   :  { %v2120_v13 = vmul.f32 0.35355338, %v1771_v12  ;;  %v3290_v14 = vpop.f32.mrb[53].mxu1 }
 0xe08   :  { %v1774_v16 = vpop.f32.mrb[54].mxu1 }
 0xe09   :  { %v3291_v17 = vpop.f32.mrb[55].mxu1  ;;  %v2128_v18 = vsel %vm713_vm11, -1e+09, %v2120_v13 }
 0xe0a   :  { %v1820_v21 = vpop.f32.mrb[44].mxu0  ;;  %v2136_v22 = vsel %vm305_vm6, %v2128_v18, -inf }
 0xe0b   :  { %v2121_v25 = vmul.f32 0.35355338, %v1820_v21  ;;  %v3296_v3 = vpop.f32.mrb[45].mxu0  ;;  %2137 = vmax.xlane.f32.xlu0 %v2136_v22 }
 0xe0c   :  { %v1823_v10 = vpop.f32.mrb[46].mxu0 }
 0xe0d   :  { %v3297_v20 = vpop.f32.mrb[47].mxu0  ;;  %v4397_v27 = vsel %vm714_vm10, -1e+09, %v2121_v25 }
 0xe0e   :  { %v2139_v0 = vsel %vm305_vm6, %v4397_v27, -inf }
 0xe0f   :  { %2140 = vmax.xlane.f32.xlu1 %v2139_v0 }
 0xe75   :  { %v1869_v29 = vpop.f32.mrb[56].mxu1  ;;  %v1918_v39 = vpop.f32.mrb[48].mxu0 }
 0xe76   :  { %v2122_v40 = vmul.f32 0.35355338, %v1869_v29  ;;  %v2123_v41 = vmul.f32 0.35355338, %v1918_v39  ;;  %v3302_v43 = vpop.f32.mrb[57].mxu1  ;;  %v3308_v19 = vpop.f32.mrb[49].mxu0 }
 0xe77   :  { %v1872_v44 = vpop.f32.mrb[58].mxu1  ;;  %v1921_v23 = vpop.f32.mrb[50].mxu0 }
 0xe78   :  { %v3303_v49 = vpop.f32.mrb[59].mxu1  ;;  %v3309_v50 = vpop.f32.mrb[51].mxu0  ;;  %v2130_v60 = vsel %vm713_vm11, -1e+09, %v2122_v40  ;;  %v2131_v48 = vsel %vm714_vm10, -1e+09, %v2123_v41 }
 0xe79   :  { %v2142_v52 = vsel %vm305_vm6, %v2130_v60, -inf  ;;  %v2145_v54 = vsel %vm305_vm6, %v2131_v48, -inf }
 0xe7a   :  { %2143 = vmax.xlane.f32.xlu0 %v2142_v52 }
 0xe7d   :  { %v1967_v51 = vpop.f32.mrb[60].mxu1  ;;  %v2016_v53 = vpop.f32.mrb[52].mxu0 }
 0xe7e   :  { %v2124_v55 = vmul.f32 0.35355338, %v1967_v51  ;;  %v2125_v57 = vmul.f32 0.35355338, %v2016_v53  ;;  %v3320_v58 = vpop.f32.mrb[53].mxu0  ;;  %2146 = vmax.xlane.f32.xlu0 %v2145_v54  ;;  %v3314_v59 = vpop.f32.mrb[61].mxu1 }
 0xe7f   :  { %v1970_v62 = vpop.f32.mrb[62].mxu1  ;;  %v2019_v4 = vpop.f32.mrb[54].mxu0 }
 0xe80   :  { %v3315_v2 = vpop.f32.mrb[63].mxu1  ;;  %v3321_v63 = vpop.f32.mrb[55].mxu0  ;;  %v2133_v6 = vsel %vm714_vm10, -1e+09, %v2125_v57  ;;  %v4411_v5 = vsel %vm713_vm11, -1e+09, %v2124_v55 }
 0xe81   :  { %v2151_v12 = vsel %vm305_vm6, %v2133_v6, -inf  ;;  %v2148_v13 = vsel %vm305_vm6, %v4411_v5, -inf }
 0xe82   :  { %2152 = vmax.xlane.f32.xlu1 %v2151_v12  ;;  %2149 = vmax.xlane.f32.xlu0 %v2148_v13 }
 0xe85   :  { %v2065_v14 = vpop.f32.mrb[64].mxu1  ;;  %v2114_v16 = vpop.f32.mrb[56].mxu0 }
 0xe86   :  { %v2126_v17 = vmul.f32 0.35355338, %v2065_v14  ;;  %v3326_v21 = vpop.f32.mrb[65].mxu1  ;;  %v3332_v22 = vpop.f32.mrb[57].mxu0  ;;  %v2127_v43 = vmul.f32 0.35355338, %v2114_v16 }
 0xe87   :  { %v2068_v25 = vpop.f32.mrb[66].mxu1  ;;  %v2117_v3 = vpop.f32.mrb[58].mxu0 }
 0xe88   :  { %v3327_v10 = vpop.f32.mrb[67].mxu1  ;;  %v3333_v20 = vpop.f32.mrb[59].mxu0  ;;  %v2134_v0 = vsel %vm713_vm11, -1e+09, %v2126_v17  ;;  %v2135_v35 = vsel %vm714_vm10, -1e+09, %v2127_v43 }
 0xe89   :  { %v2154_v29 = vsel %vm305_vm6, %v2134_v0, -inf  ;;  %v2157_v19 = vsel %vm305_vm6, %v2135_v35, -inf }
 0xe8a   :  { %2155 = vmax.xlane.f32.xlu0 %v2154_v29 }
 0xe93   :  { %2280 = vrot.lane.b32.xlu1 %v4316_v32, %s3763_s28 }
 0xe97   :  { %2328 = vrot.lane.b32.xlu1 %v4322_v46, %s3763_s28 }
 0xe98   :  { %v2138_v39 = vpop.xlane.xlu0 %2137 }
 0xe99   :  { %v2160_v40 = vsub.f32 %v2128_v18, %v2138_v39 }
 0xe9b   :  { %v2168_v41 = vmul.f32 1.442695, %v2160_v40 }
 0xe9d   :  { %3537 = vpow2.f32 %v2168_v41 }
 0xea0   :  { %2232 = vrot.lane.b32.xlu0 %v4312_v1, %s3763_s28  ;;  %v2141_v1 = vpop.xlane.xlu1 %2140 }
 0xea1   :  { %v2161_v46 = vsub.f32 %v4397_v27, %v2141_v1 }
 0xea3   :  { %v2170_v18 = vmul.f32 1.442695, %v2161_v46 }
 0xea5   :  { %3539 = vpow2.f32 %v2170_v18 }
 0xea7   :  { %v4428_v44 = vpop.eup %3537 }
 0xea8   :  { %v2184_v32 = vsel %vm305_vm6, %v4428_v44, 0.0 }
 0xeaf   :  { %v4435_v23 = vpop.eup %3539 }
 0xeb0   :  { %v2187_v33 = vsel %vm305_vm6, %v4435_v23, 0.0 }
 0xebb   :  { %2158 = vmax.xlane.f32.xlu1 %v2157_v19 }
 0xebf   :  { %2185 = vadd.xlane.f32.xlu0 %v2184_v32 }
 0xecc   :  { %2376 = vrot.lane.b32.xlu1 %v4320_v45, %s3763_s28 }
 0xef0   :  { %2188 = vadd.xlane.f32.xlu1 %v2187_v33 }
 0xf01   :  { %2472 = vrot.lane.b32.xlu1 %v4328_v47, %s3763_s28 }
 0xf07   :  { %v2144_v49 = vpop.xlane.xlu0 %2143 }
 0xf08   :  { %v2162_v50 = vsub.f32 %v2130_v60, %v2144_v49 }
 0xf0a   :  { %v2172_v52 = vmul.f32 1.442695, %v2162_v50 }
 0xf0b   :  { %v2147_v51 = vpop.xlane.xlu0 %2146 }
 0xf0c   :  { %3541 = vpow2.f32 %v2172_v52  ;;  %v2163_v45 = vsub.f32 %v2131_v48, %v2147_v51 }
 0xf0e   :  { %v2174_v54 = vmul.f32 1.442695, %v2163_v45 }
 0xf0f   :  { %v2153_v53 = vpop.xlane.xlu1 %2152  ;;  %v2150_v55 = vpop.xlane.xlu0 %2149 }
 0xf10   :  { %v2165_v27 = vsub.f32 %v2133_v6, %v2153_v53  ;;  %3543 = vpow2.f32 %v2174_v54  ;;  %v2164_v13 = vsub.f32 %v4411_v5, %v2150_v55 }
 0xf12   :  { %v2178_v47 = vmul.f32 1.442695, %v2165_v27  ;;  %v2176_v14 = vmul.f32 1.442695, %v2164_v13 }
 0xf13   :  { %v2281_v57 = vpop.permute.xlu1 %2280 }
 0xf14   :  { %v2286_v58 = vsel %vm824_vm7, %v2281_v57, 0  ;;  %3545 = vpow2.f32 %v2178_v47 }
 0xf15   :  { %3341 = vmatpush3.bf16.msra.mxu0 %v2286_v58  ;;  %3547 = vpow2.f32 %v2176_v14 }
 0xf16   :  { %v4442_v59 = vpop.eup %3541  ;;  %3352 = vmatprep.subr.bf16.mxu0 %v3757_v15 }
 0xf17   :  { %v2156_v62 = vpop.xlane.xlu0 %2155  ;;  %v2190_v60 = vsel %vm305_vm6, %v4442_v59, 0.0  ;;  %v2329_v21 = vpop.permute.xlu1 %2328 }
 0xf18   :  { %2191 = vadd.xlane.f32.xlu0 %v2190_v60  ;;  %v2166_v16 = vsub.f32 %v2134_v0, %v2156_v62 }
 0xf1a   :  { %v4449_v2 = vpop.eup %3543  ;;  %v2180_v17 = vmul.f32 1.442695, %v2166_v16 }
 0xf1b   :  { %v2233_v48 = vpop.permute.xlu0 %2232  ;;  %v2193_v63 = vsel %vm305_vm6, %v4449_v2, 0.0 }
 0xf1c   :  { %v2238_v4 = vsel %vm824_vm7, %v2233_v48, 0  ;;  %3549 = vpow2.f32 %v2180_v17 }
 0xf1d   :  { %3335 = vmatpush3.bf16.msra.mxu1 %v2238_v4 }
 0xf1e   :  { %3346 = vmatprep.subr.bf16.mxu1 %v3757_v15  ;;  %v4453_v6 = vpop.eup %3545 }
 0xf1f   :  { %v2199_v12 = vsel %vm305_vm6, %v4453_v6, 0.0  ;;  %v4460_v25 = vpop.eup %3547 }
 0xf20   :  { %v2196_v29 = vsel %vm305_vm6, %v4460_v25, 0.0 }
 0xf25   :  { %2194 = vadd.xlane.f32.xlu1 %v2193_v63 }
 0xf26   :  { %v4464_v39 = vpop.eup %3549 }
 0xf29   :  { %2200 = vadd.xlane.f32.xlu1 %v2199_v12 }
 0xf2e   :  { %2424 = vrot.lane.b32.xlu0 %v4330_v9, %s3763_s28  ;;  %v2202_v9 = vsel %vm305_vm6, %v4464_v39, 0.0 }
 0xf48   :  { %v2159_v22 = vpop.xlane.xlu1 %2158 }
 0xf49   :  { %v2167_v3 = vsub.f32 %v2135_v35, %v2159_v22  ;;  %v2334_v35 = vsel %vm824_vm7, %v2329_v21, 0 }
 0xf4b   :  { %v2182_v10 = vmul.f32 1.442695, %v2167_v3 }
 0xf4c   :  { %v2186_v20 = vpop.xlane.xlu0 %2185  ;;  %v2377_v19 = vpop.permute.xlu1 %2376 }
 0xf4d   :  { %3551 = vpow2.f32 %v2182_v10  ;;  %2197 = vadd.xlane.f32.xlu0 %v2196_v29  ;;  %v2382_v18 = vsel %vm824_vm7, %v2377_v19, 0 }
 0xf4e   :  { %3553 = vrcp.f32 %v2186_v20 }
 0xf51   :  { %2203 = vadd.xlane.f32.xlu0 %v2202_v9 }
 0xf57   :  { %v4468_v5 = vpop.eup %3551 }
 0xf58   :  { %v3554_v0 = vpop.eup %3553  ;;  %v2205_v40 = vsel %vm305_vm6, %v4468_v5, 0.0 }
 0xf59   :  { %v2216_v41 = vmul.f32 %v3554_v0, %v4428_v44  ;;  %2206 = vadd.xlane.f32.xlu1 %v2205_v40 }
 0xf5b   :  { %v2224_v43 = vpack.c.bf16 %v2216_v41, %v2216_v41 }
 0xf5d   :  { %3337 = vmatmul.mubr.msk.bf16.vlgmr.msra.gmra.mrb[68].mxu1 %vm305_vm6, %v2224_v43 }
 0xf5e   :  { %3347 = vmatpush3.bf16.msra.mxu1 %v2334_v35  ;;  %3348 = vmatprep.mubr.msk.bf16.mxu1 %vm3758_vm1, %v3757_v15 }
 0xf5f   :  { %3358 = vmatprep.subr.bf16.mxu1 %v3757_v15 }
 0xf67   :  { %2520 = vrot.lane.b32.xlu0 %v4339_v42, %s3763_s28 }
 0xf6a   :  { %2568 = vrot.lane.b32.xlu1 %v4337_v61, %s3763_s28 }
 0xf7d   :  { %v2189_v44 = vpop.xlane.xlu1 %2188 }
 0xf7e   :  { %3555 = vrcp.f32 %v2189_v44 }
 0xf81   :  { %v2473_v61 = vpop.permute.xlu1 %2472 }
 0xf82   :  { %v2478_v57 = vsel %vm824_vm7, %v2473_v61, 0 }
 0xf88   :  { %v3556_v32 = vpop.eup %3555 }
 0xf89   :  { %v2217_v1 = vmul.f32 %v3556_v32, %v4435_v23 }
 0xf8b   :  { %v2225_v46 = vpack.c.bf16 %v2217_v1, %v2217_v1 }
 0xf8d   :  { %3343 = vmatmul.mubr.msk.bf16.vlgmr.msra.gmra.mrb[60].mxu0 %vm305_vm6, %v2225_v46 }
 0xf8e   :  { %3353 = vmatpush3.bf16.msra.mxu0 %v2382_v18  ;;  %3354 = vmatprep.mubr.msk.bf16.mxu0 %vm3758_vm1, %v3757_v15 }
 0xf8f   :  { %3364 = vmatprep.subr.bf16.mxu0 %v3757_v15 }
 0xfa5   :  { %v2192_v42 = vpop.xlane.xlu0 %2191 }
 0xfa6   :  { %3557 = vrcp.f32 %v2192_v42 }
 0xfa9   :  { %v2425_v50 = vpop.permute.xlu0 %2424 }
 0xfaa   :  { %v2430_v51 = vsel %vm824_vm7, %v2425_v50, 0 }
 0xfb0   :  { %v3558_v33 = vpop.eup %3557 }
 0xfb1   :  { %v2218_v49 = vmul.f32 %v3558_v33, %v4442_v59 }
 0xfb2   :  { %v2195_v52 = vpop.xlane.xlu1 %2194 }
 0xfb3   :  { %3559 = vrcp.f32 %v2195_v52  ;;  %v2226_v23 = vpack.c.bf16 %v2218_v49, %v2218_v49 }
 0xfb5   :  { %3349 = vmatmul.mubr.msk.bf16.vlgmr.msra.gmra.mrb[72].mxu1 %vm305_vm6, %v2226_v23 }
 0xfb6   :  { %3359 = vmatpush3.bf16.msra.mxu1 %v2430_v51  ;;  %v2201_v45 = vpop.xlane.xlu1 %2200  ;;  %3360 = vmatprep.mubr.msk.bf16.mxu1 %vm3758_vm1, %v3757_v15 }
 0xfb7   :  { %3561 = vrcp.f32 %v2201_v45  ;;  %3370 = vmatprep.subr.bf16.mxu1 %v3757_v15 }
 0xfbd   :  { %v3560_v53 = vpop.eup %3559 }
 0xfbe   :  { %v2219_v54 = vmul.f32 %v3560_v53, %v4449_v2 }
 0xfc0   :  { %v2227_v27 = vpack.c.bf16 %v2219_v54, %v2219_v54 }
 0xfc1   :  { %v3562_v55 = vpop.eup %3561 }
 0xfc2   :  { %3355 = vmatmul.mubr.msk.bf16.vlgmr.msra.gmra.mrb[64].mxu0 %vm305_vm6, %v2227_v27  ;;  %v2221_v58 = vmul.f32 %v3562_v55, %v4453_v6 }
 0xfc3   :  { %3365 = vmatpush3.bf16.msra.mxu0 %v2478_v57  ;;  %3366 = vmatprep.mubr.msk.bf16.mxu0 %vm3758_vm1, %v3757_v15 }
 0xfc4   :  { %3376 = vmatprep.subr.bf16.mxu0 %v3757_v15  ;;  %v2229_v59 = vpack.c.bf16 %v2221_v58, %v2221_v58 }
 0xfca   :  { %3367 = vmatmul.mubr.msk.bf16.vlgmr.msra.gmra.mrb[68].mxu0 %vm305_vm6, %v2229_v59 }
 0xfcb   :  { %3378 = vmatprep.mubr.msk.bf16.mxu0 %vm3758_vm1, %v3757_v15 }
 0xfda   :  { %v2198_v47 = vpop.xlane.xlu0 %2197 }
 0xfdb   :  { %3563 = vrcp.f32 %v2198_v47 }
 0xfde   :  { %v2204_v62 = vpop.xlane.xlu0 %2203 }
 0xfdf   :  { %3565 = vrcp.f32 %v2204_v62 }
 0xfe2   :  { %v2521_v2 = vpop.permute.xlu0 %2520 }
 0xfe3   :  { %v2526_v12 = vsel %vm824_vm7, %v2521_v2, 0 }
 0xfe5   :  { %v3564_v60 = vpop.eup %3563 }
 0xfe6   :  { %v2220_v48 = vmul.f32 %v3564_v60, %v4460_v25  ;;  %v2207_v4 = vpop.xlane.xlu1 %2206 }
 0xfe7   :  { %3567 = vrcp.f32 %v2207_v4 }
 0xfe8   :  { %v2228_v63 = vpack.c.bf16 %v2220_v48, %v2220_v48 }
 0xfe9   :  { %v3566_v6 = vpop.eup %3565 }
 0xfea   :  { %v2569_v13 = vpop.permute.xlu1 %2568  ;;  %3361 = vmatmul.mubr.msk.bf16.vlgmr.msra.gmra.mrb[76].mxu1 %vm305_vm6, %v2228_v63  ;;  %v2222_v16 = vmul.f32 %v3566_v6, %v4464_v39 }
 0xfeb   :  { %v2574_v14 = vsel %vm824_vm7, %v2569_v13, 0  ;;  %3371 = vmatpush3.bf16.msra.mxu1 %v2526_v12  ;;  %3372 = vmatprep.mubr.msk.bf16.mxu1 %vm3758_vm1, %v3757_v15 }
 0xfec   :  { %3377 = vmatpush3.bf16.msra.mxu0 %v2574_v14  ;;  %3382 = vmatprep.subr.bf16.mxu1 %v3757_v15  ;;  %v2230_v17 = vpack.c.bf16 %v2222_v16, %v2222_v16 }
 0xfed   :  { %3388 = vmatprep.subr.bf16.mxu0 %v3757_v15 }
 0xff1   :  { %v3568_v21 = vpop.eup %3567 }
 0xff2   :  { %v2223_v22 = vmul.f32 %v3568_v21, %v4468_v5  ;;  %3373 = vmatmul.mubr.msk.bf16.vlgmr.msra.gmra.mrb[80].mxu1 %vm305_vm6, %v2230_v17 }
 0xff3   :  { %3383 = vmatpush3.bf16.msra.mxu1 %v4159_v56  ;;  %3384 = vmatprep.mubr.msk.bf16.mxu1 %vm3758_vm1, %v3757_v15 }
 0xff4   :  { %v2231_v25 = vpack.c.bf16 %v2223_v22, %v2223_v22  ;;  %3394 = vmatprep.subr.bf16.mxu1 %v3757_v15 }
 0xff6   :  { %3379 = vmatmul.mubr.msk.bf16.vlgmr.msra.gmra.mrb[72].mxu0 %vm305_vm6, %v2231_v25 }
 0xff7   :  { %3389 = vmatpush3.bf16.msra.mxu0 %v4180_v11  ;;  %3390 = vmatprep.mubr.msk.bf16.mxu0 %vm3758_vm1, %v3757_v15 }
 0xff8   :  { %3400 = vmatprep.subr.bf16.mxu0 %v3757_v15 }
0x1030   :  { %v2274_v3 = vpop.f32.mrb[68].mxu1 }
0x1031   :  { %v3338_v10 = vpop.f32.mrb[69].mxu1 }
0x1032   :  { %v2277_v20 = vpop.f32.mrb[70].mxu1 }
0x1033   :  { %v3339_v29 = vpop.f32.mrb[71].mxu1 }
0x1060   :  { %v2322_v56 = vpop.f32.mrb[60].mxu0 }
0x1061   :  { %v2616_v39 = vpack.c.bf16 %v2322_v56, %v2274_v3  ;;  %v3344_v9 = vpop.f32.mrb[61].mxu0 }
0x1062   :  { %v2325_v5 = vpop.f32.mrb[62].mxu0 }
0x1063   :  { %v3345_v0 = vpop.f32.mrb[63].mxu0  ;;  %3385 = vmatmul.mubr.msk.bf16.vlgmr.msra.gmra.mrb[84].mxu1 %vm305_vm6, %v2616_v39 }
0x1064   :  { %3395 = vmatpush3.bf16.msra.mxu1 %v4191_v24  ;;  %3396 = vmatprep.mubr.msk.bf16.mxu1 %vm3758_vm1, %v3757_v15 }
0x1065   :  { %3406 = vmatprep.subr.bf16.mxu1 %v3757_v15 }
0x1088   :  { %v2370_v11 = vpop.f32.mrb[72].mxu1 }
0x1089   :  { %v3350_v40 = vpop.f32.mrb[73].mxu1 }
0x108a   :  { %v2373_v41 = vpop.f32.mrb[74].mxu1 }
0x108b   :  { %v3351_v43 = vpop.f32.mrb[75].mxu1 }
0x1095   :  { %v2418_v35 = vpop.f32.mrb[64].mxu0 }
0x1096   :  { %v2663_v19 = vpack.c.bf16 %v2418_v35, %v2370_v11  ;;  %v3356_v44 = vpop.f32.mrb[65].mxu0 }
0x1097   :  { %v2421_v32 = vpop.f32.mrb[66].mxu0 }
0x1098   :  { %v3357_v1 = vpop.f32.mrb[67].mxu0  ;;  %3391 = vmatmul.mubr.msk.bf16.vlgmr.msra.gmra.mrb[76].mxu0 %vm305_vm6, %v2663_v19 }
0x1099   :  { %3401 = vmatpush3.bf16.msra.mxu0 %v4199_v30  ;;  %3402 = vmatprep.mubr.msk.bf16.mxu0 %vm3758_vm1, %v3757_v15 }
0x109a   :  { %3414 = vmatprep.subr.bf16.mxu0 %v3757_v15 }
0x109d   :  { %v2514_v24 = vpop.f32.mrb[68].mxu0 }
0x109e   :  { %v3368_v46 = vpop.f32.mrb[69].mxu0 }
0x109f   :  { %v2517_v18 = vpop.f32.mrb[70].mxu0 }
0x10a0   :  { %v3369_v42 = vpop.f32.mrb[71].mxu0 }
0x10bd   :  { %v2466_v61 = vpop.f32.mrb[76].mxu1 }
0x10be   :  { %v2710_v33 = vpack.c.bf16 %v2514_v24, %v2466_v61  ;;  %v3362_v49 = vpop.f32.mrb[77].mxu1 }
0x10bf   :  { %v2469_v50 = vpop.f32.mrb[78].mxu1 }
0x10c0   :  { %v3363_v52 = vpop.f32.mrb[79].mxu1  ;;  %3397 = vmatmul.mubr.msk.bf16.vlgmr.msra.gmra.mrb[88].mxu1 %vm305_vm6, %v2710_v33 }
0x10c1   :  { %3407 = vmatpush3.bf16.msra.mxu1 %v4229_v34  ;;  %3410 = vmatprep.mubr.msk.bf16.mxu1 %vm3758_vm1, %v3757_v15 }
0x10c2   :  { %3408 = vmatprep.subr.bf16.mxu1 %v3757_v15 }
0x10c5   :  { %v2562_v30 = vpop.f32.mrb[80].mxu1  ;;  %3409 = vmatpush3.bf16.msra.mxu1 %v4235_v36 }
0x10c6   :  { %v3374_v23 = vpop.f32.mrb[81].mxu1 }
0x10c7   :  { %v2565_v51 = vpop.f32.mrb[82].mxu1 }
0x10c8   :  { %v3375_v45 = vpop.f32.mrb[83].mxu1  ;;  %v3583_v51 = vld [vmem:[#allocation10] ss:$0 sm:$0xff] }
0x10c9   :  { %v2610_v53 = vpop.f32.mrb[72].mxu0 }
0x10ca   :  { %v2757_v54 = vpack.c.bf16 %v2610_v53, %v2562_v30  ;;  %v3380_v27 = vpop.f32.mrb[73].mxu0 }
0x10cb   :  { %v2613_v55 = vpop.f32.mrb[74].mxu0 }
0x10cc   :  { %v3381_v57 = vpop.f32.mrb[75].mxu0  ;;  %3403 = vmatmul.mubr.msk.bf16.vlgmr.msra.gmra.mrb[80].mxu0 %vm305_vm6, %v2757_v54 }
0x10cd   :  { %3415 = vmatpush3.bf16.msra.mxu0 %v4243_v37  ;;  %3422 = vmatprep.mubr.msk.bf16.mxu0 %vm3758_vm1, %v3757_v15  ;;  %v3582_v37 = vld [vmem:[#allocation8] ss:$0 sm:$0xff]  ;;  %v3584_v57 = vld [vmem:[#allocation11] ss:$0 sm:$0xff] }
0x10ce   :  { %3416 = vmatprep.subr.bf16.mxu0 %v3757_v15 }
0x10d1   :  { %3417 = vmatpush3.bf16.msra.mxu0 %v4249_v38 }
0x10d2   :  { %3418 = vmatprep.subr.bf16.mxu0 %v3757_v15 }
0x10d5   :  { %3419 = vmatpush3.bf16.msra.mxu0 %v4268_v7 }
0x10d6   :  { %3420 = vmatprep.subr.bf16.mxu0 %v3757_v15 }
0x10d9   :  { %3421 = vmatpush3.bf16.msra.mxu0 %v4275_v8 }
0x1136   :  { %v2654_v34 = vpop.f32.mrb[84].mxu1 }
0x1137   :  { %v3386_v36 = vpop.f32.mrb[85].mxu1  ;;  %v2661_v47 = vadd.f32 %v3582_v37, %v2654_v34 }
0x1138   :  { %v2657_v58 = vpop.f32.mrb[86].mxu1 }
0x1139   :  { %v3387_v59 = vpop.f32.mrb[87].mxu1  ;;  %v2662_v60 = vadd.f32 %v3582_v37, %v2657_v58  ;;  %v3585_v37 = vld [vmem:[%s4600_s11] ss:$0 sm:$0xff] }
0x116b   :  { %v2701_v62 = vpop.f32.mrb[76].mxu0 }
0x116c   :  { %v2708_v48 = vadd.f32 %v2701_v62, %v2661_v47  ;;  %v3392_v4 = vpop.f32.mrb[77].mxu0 }
0x116d   :  { %v2704_v2 = vpop.f32.mrb[78].mxu0 }
0x116e   :  { %v2709_v38 = vadd.f32 %v2704_v2, %v2662_v60  ;;  %v3393_v63 = vpop.f32.mrb[79].mxu0 }
0x1193   :  { %v2748_v6 = vpop.f32.mrb[88].mxu1 }
0x1194   :  { %v2755_v12 = vadd.f32 %v2748_v6, %v2708_v48  ;;  %v3398_v7 = vpop.f32.mrb[89].mxu1 }
0x1195   :  { %v2751_v13 = vpop.f32.mrb[90].mxu1 }
0x1196   :  { %v2756_v15 = vadd.f32 %v2751_v13, %v2709_v38  ;;  %v3399_v14 = vpop.f32.mrb[91].mxu1 }
0x1197   :  { %v3586_v14 = vld [vmem:[%s4602_s13] ss:$0 sm:$0xff] }
0x119f   :  { %v2795_v8 = vpop.f32.mrb[80].mxu0 }
0x11a0   :  { %v2802_v16 = vadd.f32 %v2795_v8, %v2755_v12  ;;  %v3404_v17 = vpop.f32.mrb[81].mxu0 }
0x11a1   :  { %v2798_v21 = vpop.f32.mrb[82].mxu0 }
0x11a2   :  { %v4551_v22 = vadd.f32 %v2802_v16, %v4292_v28  ;;  %v2803_v25 = vadd.f32 %v2798_v21, %v2756_v15  ;;  %v3405_v3 = vpop.f32.mrb[83].mxu0 }
0x11a4   :  { %v4554_v10 = vadd.f32 %v2803_v25, %v4296_v31  ;;  %v2806_v20 = vsel %vm153_vm0, %v4551_v22, 0.0 }
0x11a5   :  { %2807 = vadd.xlane.f32.xlu0 %v2806_v20 }
0x11a6   :  { %v2809_v29 = vsel %vm153_vm0, %v4554_v10, 0.0 }
0x11a7   :  { %2810 = vadd.xlane.f32.xlu1 %v2809_v29 }
0x1232   :  { %v2808_v56 = vpop.xlane.xlu0 %2807 }
0x1233   :  { %v2812_v39 = vmul.f32 0.03125, %v2808_v56 }
0x1234   :  { %v2811_v9 = vpop.xlane.xlu1 %2810 }
0x1235   :  { %v2814_v5 = vsub.f32 %v4551_v22, %v2812_v39  ;;  %v2813_v28 = vmul.f32 0.03125, %v2811_v9 }
0x1237   :  { %v2815_v0 = vsub.f32 %v4554_v10, %v2813_v28  ;;  %v2816_v11 = vmul.f32 %v2814_v5, %v2814_v5  ;;  %v2844_v45 = vmul.f32 %v3583_v51, %v2814_v5 }
0x1239   :  { %v2818_v31 = vsel %vm153_vm0, %v2816_v11, 0.0  ;;  %v2817_v40 = vmul.f32 %v2815_v0, %v2815_v0  ;;  %v2845_v53 = vmul.f32 %v3583_v51, %v2815_v0 }
0x123a   :  { %2819 = vadd.xlane.f32.xlu0 %v2818_v31 }
0x123b   :  { %v2821_v41 = vsel %vm153_vm0, %v2817_v40, 0.0 }
0x123e   :  { %2822 = vadd.xlane.f32.xlu0 %v2821_v41 }
0x12c7   :  { %v2820_v43 = vpop.xlane.xlu0 %2819 }
0x12c8   :  { %v2824_v35 = vmul.f32 0.032258064, %v2820_v43 }
0x12ca   :  { %3569 = vrsqrt.f32 %v2824_v35  ;;  %vm2828_vm1 = vcmp.eq.f32.partialorder %v2824_v35, inf  ;;  %v2831_v24 = vand.u32 2147483648, %v2824_v35  ;;  %vm2830_vm6 = vcmp.eq.f32.partialorder %v2824_v35, 0.0 }
0x12cb   :  { %v2823_v19 = vpop.xlane.xlu0 %2822 }
0x12cc   :  { %v2825_v44 = vmul.f32 0.032258064, %v2823_v19 }
0x12ce   :  { %3571 = vrsqrt.f32 %v2825_v44  ;;  %vm2835_vm7 = vcmp.eq.f32.partialorder %v2825_v44, inf  ;;  %v2838_v49 = vand.u32 2147483648, %v2825_v44  ;;  %vm2837_vm9 = vcmp.eq.f32.partialorder %v2825_v44, 0.0 }
0x12d4   :  { %v3570_v32 = vpop.eup %3569 }
0x12d5   :  { %v2827_v1 = vmul.f32 %v3570_v32, %v2824_v35 }
0x12d7   :  { %v2829_v46 = vsel %vm2828_vm1, %v2824_v35, %v2827_v1 }
0x12d8   :  { %v3572_v18 = vpop.eup %3571  ;;  %v2832_v42 = vsel %vm2830_vm6, %v2831_v24, %v2829_v46 }
0x12d9   :  { %v2840_v61 = vadd.f32 1e-06, %v2832_v42  ;;  %v2834_v33 = vmul.f32 %v3572_v18, %v2825_v44 }
0x12db   :  { %3573 = vrcp.f32 %v2840_v61  ;;  %v2836_v50 = vsel %vm2835_vm7, %v2825_v44, %v2834_v33 }
0x12dc   :  { %v2839_v52 = vsel %vm2837_vm9, %v2838_v49, %v2836_v50 }
0x12dd   :  { %v2841_v30 = vadd.f32 1e-06, %v2839_v52 }
0x12df   :  { %3575 = vrcp.f32 %v2841_v30 }
0x12e5   :  { %v3574_v23 = vpop.eup %3573 }
0x12e6   :  { %v2846_v54 = vmul.f32 %v3574_v23, %v2844_v45 }
0x12e8   :  { %v2848_v34 = vadd.f32 %v3584_v57, %v2846_v54 }
0x12e9   :  { %v3576_v27 = vpop.eup %3575 }
0x12ea   :  { %v2847_v55 = vmul.f32 %v3576_v27, %v2845_v53 }
0x12ec   :  { %v2849_v36 = vadd.f32 %v3584_v57, %v2847_v55 }
0x12ee   :  { %v2850_v58 = vpack.c.bf16 %v2849_v36, %v2848_v34 }
0x12f0   :  { %3411 = vmatmul.mubr.msk.bf16.vlgmr.msra.gmra.mrb[92].mxu1 %vm153_vm0, %v2850_v58 }
0x13c3   :  { %v2888_v59 = vpop.f32.mrb[92].mxu1 }
0x13c4   :  { %v2889_v47 = vadd.f32 %v3585_v37, %v2888_v59  ;;  %v3412_v62 = vpop.f32.mrb[93].mxu1 }
0x13c5   :  { %v2891_v60 = vpop.f32.mrb[94].mxu1 }
0x13c6   :  { %v2892_v48 = vadd.f32 %v3585_v37, %v2891_v60  ;;  %v3413_v4 = vpop.f32.mrb[95].mxu1  ;;  %v2895_v2 = vmax.f32 %v2889_v47, 0.0 }
0x13c8   :  { %v2896_v38 = vmax.f32 %v2892_v48, 0.0 }
0x13ca   :  { %v2897_v63 = vpack.c.bf16 %v2896_v38, %v2895_v2 }
0x13cc   :  { %3423 = vmatmul.mubr.msk.bf16.vlgmr.msra.gmra.mrb[84].mxu0 %vm1564_vm2, %v2897_v63 }
0x149f   :  { %v2935_v6 = vpop.f32.mrb[84].mxu0 }
0x14a0   :  { %v2936_v12 = vadd.f32 %v4288_v26, %v2935_v6  ;;  %v3424_v7 = vpop.f32.mrb[85].mxu0 }
0x14a1   :  { %v2938_v13 = vpop.f32.mrb[86].mxu0 }
0x14a2   :  { %v2942_v15 = vadd.f32 %v2936_v12, %v4551_v22  ;;  %v2939_v8 = vadd.f32 %v3586_v14, %v2938_v13  ;;  %v3425_v16 = vpop.f32.mrb[87].mxu0 }
0x14a4   :  { %2944 = vst.msk [vmem:[#allocation13] sm:$0xff] %vm153_vm0, %v2942_v15  ;;  %v2943_v17 = vadd.f32 %v2939_v8, %v4554_v10 }
0x14a6   :  { %2945 = vst.msk [vmem:[#allocation13 + $0x8] sm:$0xff] %vm153_vm0, %v2943_v17 }
0x14a7   :  { %3730 = shalt.err (!%p3727_p10)
}
0x14a8   :  { %s3731_s13 = scalar_lea.hbm %s4603_s14, 256 }
0x14a9   :  { %p3732_p11 = scmp.ne.s32.totalorder %s4603_s14, %s3731_s13  ;;  %p3735_p12 = scmp.lt.u32.totalorder %s3731_s13, %s4603_s14 }
0x14ab   :  { %p3737_p13 = pnand %p3735_p12, %p3732_p11 }
0x14ad   :  { %3740 = shalt.err (!%p3737_p13)
}
0x14ae   :  { %s3766_s0 = smov 128   ;;  %s3767_s9 = smov 8  }
0x14af   :  { %2957 = dma.vmem_to_hbm [thread:$0]  %s2952_s27, 256, %s4603_s14, [#allocation4], %s3766_s0, %s3766_s0, %s3767_s9  }
0x14b0   :  { %3749 = dma.done.wait [#allocation4], 256  }
0x14b1   :  { %3750 = vsyncadd [#allocation4], 4294967040 }
0x14b2   :  { %2961 = vsyncpa [#allocation3], 1 }
0x14b3   :  { %2962 = vsyncpa [#allocation6], 1 }
0x14b4   :  { %2963 = vsyncpa [#allocation9], 1 }
0x14b5   :  { %2964 = vsyncpa [#allocation12], 1 }
0x14b6   :  { %2965 = vsyncpa [#allocation4], 1 }

</bundles_post_ra>
